<compile_context>
chip_gen: v7x
topology: tpu7x:2x2x1
jax: 0.10.0
libtpu: 0.0.40
codegen_flags: <defaults>
</compile_context>

<pallas_src>
import math

import numpy as np
import jax
import jax.numpy as jnp
from jax.experimental import pallas as pl
from jax.experimental.pallas import tpu as pltpu

NEG_SLOPE = 0.01  # nn.LeakyReLU() default negative slope


# --------------------------------------------------------------------------
# Pallas kernel (one grid step = one tile of nodes, node axis is lane-dense)
# --------------------------------------------------------------------------
def _snapshot_weighter_kernel(
    offs_ref,                                   # SMEM [G+1] int32 (scalar prefetch)
    x_t_ref, mask_ref,                          # per-tile streams: [4F,T] bf16, [1,T] f32
    w_fused_t_ref, b_fused_t_ref, attn_col_ref, w_out_ref, b_out_ref,   # resident params
    out_ref,                                    # [G, F] (revisited accumulator output)
    m_ref, l_ref, acc_ref,                      # scratch: [G,1], [G,1], [G,F]
):
    F = w_out_ref.shape[0]
    G = out_ref.shape[0]
    T = x_t_ref.shape[1]
    step = pl.program_id(0)
    last = pl.num_programs(0) - 1

    @pl.when(step == 0)
    def _init():
        m_ref[...] = jnp.full_like(m_ref, -1e30)      # finite sentinel (no -inf -> no NaN)
        l_ref[...] = jnp.zeros_like(l_ref)
        acc_ref[...] = jnp.zeros_like(acc_ref)

    x_t = x_t_ref[...]                                              # [4F, T] bf16

    # --- fused projection: [2F,4F] @ [4F,T] bf16 matmul on the MXU ----------
    y = jnp.dot(w_fused_t_ref[...], x_t,
                preferred_element_type=jnp.float32) + b_fused_t_ref[...]    # [2F, T] f32
    y = jnp.maximum(y, NEG_SLOPE * y)                               # LeakyReLU
    logits = (jnp.sum(y * attn_col_ref[...], axis=0, keepdims=True)
              + mask_ref[...])                                      # [1, T]

    # --- in-kernel membership from scalar-prefetched segment offsets --------
    row_ids = step * T + jax.lax.broadcasted_iota(jnp.int32, (G, T), 1)     # [G, T]
    g_col = jax.lax.broadcasted_iota(jnp.int32, (G, 1), 0)                  # [G, 1]
    starts = jnp.zeros((G, 1), jnp.int32)
    ends = jnp.zeros((G, 1), jnp.int32)
    for g in range(G):                                              # G tiny & static
        starts = jnp.where(g_col == g, offs_ref[g], starts)
        ends = jnp.where(g_col == g, offs_ref[g + 1], ends)
    member_b = jnp.logical_and(row_ids >= starts, row_ids < ends)   # [G, T] bool
    member = member_b.astype(jnp.float32)                           # padded rows -> all 0

    # --- online segment softmax (running per-graph max / sum), [G,T] layout --
    masked = jnp.where(member_b, logits, -1e30)                     # [G, T]
    tile_max = jnp.max(masked, axis=1, keepdims=True)               # [G, 1]
    m_old = m_ref[...]
    m_new = jnp.maximum(m_old, tile_max)                            # [G, 1]
    alpha = jnp.exp(m_old - m_new)                                  # [G, 1]
    m_ref[...] = m_new

    node_max = jnp.sum(member * m_new, axis=0, keepdims=True)       # [1, T]
    w = jnp.exp(logits - node_max)                                  # [1, T]
    wm = member * w                                                 # [G, T]
    l_ref[...] = alpha * l_ref[...] + jnp.sum(wm, axis=1, keepdims=True)    # [G, 1]

    # --- weighted readout accumulator [G, F] ---------------------------------
    papers_t = x_t[:F, :].astype(jnp.float32)                       # [F, T]
    acc_ref[...] = alpha * acc_ref[...] + jax.lax.dot_general(
        wm, papers_t, (((1,), (1,)), ((), ())),
        preferred_element_type=jnp.float32)                         # [G, F]

    # --- finalize: normalize + fc_out on the last node tile ------------------
    @pl.when(step == last)
    def _finalize():
        l_safe = jnp.maximum(l_ref[...], 1e-30)                     # empty-segment guard
        pooled = acc_ref[...] / l_safe                              # [G, F]
        out = jnp.dot(pooled, w_out_ref[...],
                      preferred_element_type=jnp.float32) + b_out_ref[...]  # [G, F]
        out_ref[...] = out.astype(out_ref.dtype)


# --------------------------------------------------------------------------
# Wrapper: host-side glue + pallas_call
# --------------------------------------------------------------------------
def snapshot_weighter_pallas(params, node_attrs, cur_snapshot_types,
                             num_nodes, papers, snapshots, node_attr_types,
                             tile_n=1024):
    """Pallas-backed forward pass.  Returns (sum_out [G, F], index [N])."""
    F = papers.shape[-1]
    G = snapshots.shape[0]
    N = papers.shape[0]
    assert tile_n % 128 == 0

    # ---- host-side glue (mirrors the DGL bookkeeping in forward()) ---------
    nn_np = np.asarray(num_nodes, dtype=np.int64)
    offsets = jnp.asarray(
        np.concatenate([[0], np.cumsum(nn_np)]).astype(np.int32))          # [G+1]
    index = jnp.asarray(np.repeat(np.arange(G, dtype=np.int32), nn_np))    # [N]

    src_type_h = jnp.zeros((N, F), jnp.float32)
    for t in node_attr_types:
        src_type_h = src_type_h + params["node_attr_emb"][t][node_attrs[t]]

    dst_type_h_g = params["snapshot_emb"][cur_snapshot_types][index]       # [N, F]
    hdst_g = snapshots[index]                                              # [N, F]

    attr_sum = sum(node_attrs[t].astype(jnp.int32) for t in node_attr_types)
    mask = jnp.where(attr_sum == 0, -1e8, 0.0).astype(jnp.float32)         # [N]

    # fused projection input [N,4F]; papers first so the kernel slices them out.
    x = jnp.concatenate(
        [papers.astype(jnp.float32), hdst_g.astype(jnp.float32),
         src_type_h, dst_type_h_g.astype(jnp.float32)], axis=-1)           # [N, 4F]
    x_t = x.T.astype(jnp.bfloat16)                                         # [4F, N] bf16

    # ---- pad the node axis to a multiple of tile_n --------------------------
    n_pad = pl.cdiv(N, tile_n) * tile_n
    pad = n_pad - N
    if pad:
        x_t = jnp.pad(x_t, ((0, 0), (0, pad)))
        mask = jnp.pad(mask, ((0, pad),), constant_values=-1e9)
    mask_row = mask.reshape(1, n_pad)                                      # lane-dense

    # ---- fused projection weights, transposed for [2F,4F]@[4F,T] ------------
    zF = jnp.zeros((F, F), jnp.float32)
    w_fused = jnp.concatenate([
        jnp.concatenate([params["w_src"], zF], axis=1),
        jnp.concatenate([params["w_dst"], zF], axis=1),
        jnp.concatenate([zF, params["w_src_t"]], axis=1),
        jnp.concatenate([zF, params["w_dst_t"]], axis=1),
    ], axis=0)                                                             # [4F, 2F]
    w_fused_t = w_fused.T.astype(jnp.bfloat16)                             # [2F, 4F]
    b_fused_t = jnp.concatenate(
        [params["b_src"] + params["b_dst"] + params["bias"],
         params["b_src_t"] + params["b_dst_t"] + params["bias_t"]],
        axis=-1).reshape(2 * F, 1)                                         # [2F, 1]
    attn_col = jnp.concatenate([params["attn"], params["attn_t"]],
                               axis=-1).reshape(2 * F, 1)                  # [2F, 1]

    num_tiles = n_pad // tile_n

    grid_spec = pltpu.PrefetchScalarGridSpec(
        num_scalar_prefetch=1,                  # offsets -> SMEM, no [N,G] onehot stream
        grid=(num_tiles,),
        in_specs=[
            # TODO(synk): sweep pipeline_mode=pl.Buffered(3) on x once benchmarking.
            pl.BlockSpec((4 * F, tile_n), lambda i, offs: (0, i)),   # x_t (node-tiled)
            pl.BlockSpec((1, tile_n), lambda i, offs: (0, i)),       # mask (lane-dense)
            pl.BlockSpec((2 * F, 4 * F), lambda i, offs: (0, 0)),    # w_fused_t (resident)
            pl.BlockSpec((2 * F, 1), lambda i, offs: (0, 0)),        # b_fused_t
            pl.BlockSpec((2 * F, 1), lambda i, offs: (0, 0)),        # attn_col
            pl.BlockSpec((F, F), lambda i, offs: (0, 0)),            # w_out
            pl.BlockSpec((1, F), lambda i, offs: (0, 0)),            # b_out
        ],
        out_specs=pl.BlockSpec((G, F), lambda i, offs: (0, 0)),      # revisited accumulator
        scratch_shapes=[
            pltpu.VMEM((G, 1), jnp.float32),    # running per-graph max
            pltpu.VMEM((G, 1), jnp.float32),    # running per-graph sum
            pltpu.VMEM((G, F), jnp.float32),    # pooled accumulator
        ],
    )
    # TODO(synk): on v7x, split the node-tile axis across the two TensorCores
    # (leading "parallel" axis with per-core partial m/l/acc + tiny merge epilogue).
    sum_out = pl.pallas_call(
        _snapshot_weighter_kernel,
        out_shape=jax.ShapeDtypeStruct((G, F), jnp.float32),
        grid_spec=grid_spec,
        compiler_params=pltpu.CompilerParams(
            dimension_semantics=("arbitrary",),
            vmem_limit_bytes=32 * 1024 * 1024),   # explicit, v7x-safe (64 MiB physical)
    )(offsets, x_t, mask_row, w_fused_t, b_fused_t, attn_col,
      params["w_out"], params["b_out"])
    return sum_out, index


# --------------------------------------------------------------------------
# Deterministic parameter init (shapes taken from the module __init__)
# --------------------------------------------------------------------------
def init_params(key, out_feats, snapshot_types, node_attr_types):
    F = out_feats
    keys = jax.random.split(key, 32)
    k = iter(keys)
    bound = 1.0 / math.sqrt(F)

    def linear(kk):
        kw, kb = jax.random.split(kk)
        w = jax.random.uniform(kw, (F, F), jnp.float32, -bound, bound)
        b = jax.random.uniform(kb, (1, F), jnp.float32, -bound, bound)
        return w, b

    p = {}
    p["w_src"], p["b_src"] = linear(next(k))
    p["w_dst"], p["b_dst"] = linear(next(k))
    p["w_src_t"], p["b_src_t"] = linear(next(k))
    p["w_dst_t"], p["b_dst_t"] = linear(next(k))
    p["w_out"], p["b_out"] = linear(next(k))

    snap_emb = jax.random.normal(next(k), (snapshot_types + 1, F), jnp.float32)
    snap_emb = snap_emb.at[-1].set(0.0)                 # padding_idx=-1
    p["snapshot_emb"] = snap_emb

    p["node_attr_emb"] = {}
    for t in node_attr_types:
        emb = jax.random.normal(next(k), (2, F), jnp.float32)
        emb = emb.at[0].set(0.0)                        # padding_idx=0
        p["node_attr_emb"][t] = emb

    gain = math.sqrt(2.0)
    std = gain * math.sqrt(2.0 / (1 + F))
    p["attn"] = std * jax.random.normal(next(k), (1, F), jnp.float32)
    p["attn_t"] = std * jax.random.normal(next(k), (1, F), jnp.float32)
    p["bias"] = jax.random.uniform(next(k), (1, F), jnp.float32, -bound, bound)
    p["bias_t"] = jax.random.uniform(next(k), (1, F), jnp.float32, -bound, bound)
    return p


# --------------------------------------------------------------------------
# Plain-JAX reference (for correctness check)
# --------------------------------------------------------------------------
def snapshot_weighter_ref(params, node_attrs, cur_snapshot_types,
                          num_nodes, papers, snapshots, node_attr_types):
    F = papers.shape[-1]
    G = snapshots.shape[0]
    N = papers.shape[0]
    hp = jax.lax.Precision.HIGHEST
    index = jnp.asarray(np.repeat(np.arange(G, dtype=np.int32),
                                  np.asarray(num_nodes)))

    def leaky(x):
        return jnp.where(x > 0, x, NEG_SLOPE * x)

    feat_src = jnp.dot(papers, params["w_src"], precision=hp) + params["b_src"]
    hdst_g = snapshots[index]
    feat_dst = jnp.dot(hdst_g, params["w_dst"], precision=hp) + params["b_dst"]
    e = leaky(feat_src + feat_dst + params["bias"])
    e = jnp.sum(e * params["attn"], axis=-1)

    src_type_h = jnp.zeros((N, F), jnp.float32)
    for t in node_attr_types:
        src_type_h = src_type_h + params["node_attr_emb"][t][node_attrs[t]]
    dst_type_h = params["snapshot_emb"][cur_snapshot_types][index]
    et = leaky(jnp.dot(src_type_h, params["w_src_t"], precision=hp) + params["b_src_t"]
               + jnp.dot(dst_type_h, params["w_dst_t"], precision=hp) + params["b_dst_t"]
               + params["bias_t"])
    et = jnp.sum(et * params["attn_t"], axis=-1)

    attr_sum = sum(node_attrs[t].astype(jnp.int32) for t in node_attr_types)
    mask = jnp.where(attr_sum == 0, -1e8, 0.0)
    logits = e + et + mask

    seg_max = jax.ops.segment_max(logits, index, num_segments=G)
    ex = jnp.exp(logits - seg_max[index])
    seg_sum = jax.ops.segment_sum(ex, index, num_segments=G)
    a = ex / seg_sum[index]

    pooled = jax.ops.segment_sum(papers * a[:, None], index, num_segments=G)
    return jnp.dot(pooled, params["w_out"], precision=hp) + params["b_out"], index


# --------------------------------------------------------------------------
if __name__ == "__main__":
    out_feats = 32
    snapshot_types = 3
    node_attr_types = ["is_cite", "is_ref", "is_venue"]

    # 3 graphs (one intentionally empty) -> exercises multi-tile online softmax,
    # node-axis padding and the empty-segment guard.  N=2600 -> 3 tiles of 1024.
    num_nodes = (1500, 0, 1100)
    G = len(num_nodes)
    N = int(sum(num_nodes))

    key = jax.random.PRNGKey(0)
    kp, kx, ks, kt, ka = jax.random.split(key, 5)
    params = init_params(kp, out_feats, snapshot_types, node_attr_types)

    papers = jax.random.normal(kx, (N, out_feats), jnp.float32)
    snapshots = jax.random.normal(ks, (G, out_feats), jnp.float32)
    cur_snapshot_types = jax.random.randint(kt, (G,), 0, snapshot_types)

    attr_keys = jax.random.split(ka, len(node_attr_types))
    node_attrs = {}
    for t, kk in zip(node_attr_types, attr_keys):
        node_attrs[t] = jax.random.randint(kk, (N,), 0, 2).astype(jnp.int32)
    for t in node_attr_types:            # force a few all-zero nodes -> mask path
        node_attrs[t] = node_attrs[t].at[3].set(0)
        node_attrs[t] = node_attrs[t].at[1700].set(0)

    out, index = snapshot_weighter_pallas(
        params, node_attrs, cur_snapshot_types, num_nodes,
        papers, snapshots, node_attr_types, tile_n=1024)
    out = jax.block_until_ready(out)

    ref, _ = snapshot_weighter_ref(
        params, node_attrs, cur_snapshot_types, num_nodes,
        papers, snapshots, node_attr_types)
    assert out.shape == (G, out_feats)
    # bf16 projection inputs -> tolerance loosened vs the f32-HIGHEST reference
    np.testing.assert_allclose(np.asarray(out), np.asarray(ref),
                               rtol=2e-2, atol=2e-2)
    print("KERNEL_OK")
</pallas_src>

<mosaic_0001>
module attributes {stable_mosaic.version = 11 : i64} {
  func.func @_snapshot_weighter_kernel(%arg0: i32, %arg1: memref<4xi32, #tpu.memory_space<smem>>, %arg2: memref<128x1024xbf16, #tpu.memory_space<vmem>>, %arg3: memref<1x1024xf32, #tpu.memory_space<vmem>>, %arg4: memref<64x128xbf16, #tpu.memory_space<vmem>>, %arg5: memref<64x1xf32, #tpu.memory_space<vmem>>, %arg6: memref<64x1xf32, #tpu.memory_space<vmem>>, %arg7: memref<32x32xf32, #tpu.memory_space<vmem>>, %arg8: memref<1x32xf32, #tpu.memory_space<vmem>>, %arg9: memref<3x32xf32, #tpu.memory_space<vmem>>, %arg10: memref<3x1xf32, #tpu.memory_space<vmem>>, %arg11: memref<3x1xf32, #tpu.memory_space<vmem>>, %arg12: memref<3x32xf32, #tpu.memory_space<vmem>>) attributes {dimension_semantics = [#tpu.dimension_semantics<arbitrary>], iteration_bounds = array<i64: 3>, scalar_prefetch = 1 : i64, scratch_operands = 3 : i64, tpu.core_type = #tpu.core_type<tc>, window_params = [{transform_indices = @transform_0, window_bounds = array<i64: 128, 1024>}, {transform_indices = @transform_1, window_bounds = array<i64: 1, 1024>}, {pipeline_mode = #tpu.pipeline_mode<synchronous>, transform_indices = @transform_2, window_bounds = array<i64: 64, 128>}, {pipeline_mode = #tpu.pipeline_mode<synchronous>, transform_indices = @transform_3, window_bounds = array<i64: 64, 1>}, {pipeline_mode = #tpu.pipeline_mode<synchronous>, transform_indices = @transform_4, window_bounds = array<i64: 64, 1>}, {pipeline_mode = #tpu.pipeline_mode<synchronous>, transform_indices = @transform_5, window_bounds = array<i64: 32, 32>}, {pipeline_mode = #tpu.pipeline_mode<synchronous>, transform_indices = @transform_6, window_bounds = array<i64: 1, 32>}, {pipeline_mode = #tpu.pipeline_mode<synchronous>, transform_indices = @transform_7, window_bounds = array<i64: 3, 32>}]} {
    %c0_i32 = arith.constant 0 : i32
    %0 = arith.cmpi eq, %arg0, %c0_i32 : i32
    %1 = arith.extui %0 : i1 to i32
    %c0_i32_0 = arith.constant 0 : i32
    %2 = arith.cmpi ne, %1, %c0_i32_0 : i32
    scf.if %2 {
      %cst_40 = arith.constant -1.000000e+30 : f32
      %99 = vector.broadcast %cst_40 : f32 to vector<3x1xf32>
      %c0_41 = arith.constant 0 : index
      %c0_42 = arith.constant 0 : index
      %100 = vector.load %arg10[%c0_41, %c0_42] : memref<3x1xf32, #tpu.memory_space<vmem>>, vector<3x1xf32>
      tpu.vector_store %arg10[%c0_41, %c0_42], %99 {strides = array<i32>} : memref<3x1xf32, #tpu.memory_space<vmem>>, vector<3x1xf32>,
      %cst_43 = arith.constant 0.000000e+00 : f32
      %101 = vector.broadcast %cst_43 : f32 to vector<3x1xf32>
      %c0_44 = arith.constant 0 : index
      %c0_45 = arith.constant 0 : index
      %102 = vector.load %arg11[%c0_44, %c0_45] : memref<3x1xf32, #tpu.memory_space<vmem>>, vector<3x1xf32>
      tpu.vector_store %arg11[%c0_44, %c0_45], %101 {strides = array<i32>} : memref<3x1xf32, #tpu.memory_space<vmem>>, vector<3x1xf32>,
      %cst_46 = arith.constant 0.000000e+00 : f32
      %103 = vector.broadcast %cst_46 : f32 to vector<3x32xf32>
      %c0_47 = arith.constant 0 : index
      %c0_48 = arith.constant 0 : index
      %104 = vector.load %arg12[%c0_47, %c0_48] : memref<3x32xf32, #tpu.memory_space<vmem>>, vector<3x32xf32>
      tpu.vector_store %arg12[%c0_47, %c0_48], %103 {strides = array<i32>} : memref<3x32xf32, #tpu.memory_space<vmem>>, vector<3x32xf32>,
    } else {
    }
    %c0 = arith.constant 0 : index
    %c0_1 = arith.constant 0 : index
    %3 = vector.load %arg2[%c0, %c0_1] : memref<128x1024xbf16, #tpu.memory_space<vmem>>, vector<128x1024xbf16>
    %c0_2 = arith.constant 0 : index
    %c0_3 = arith.constant 0 : index
    %4 = vector.load %arg4[%c0_2, %c0_3] : memref<64x128xbf16, #tpu.memory_space<vmem>>, vector<64x128xbf16>
    %cst = arith.constant dense<0.000000e+00> : vector<64x1024xf32>
    %5 = tpu.matmul %4, %3, %cst {dimension_numbers = #tpu.dot_dimension_numbers<[1], [0], [0], [1], [0, 0, 1, 1], [], []>} : vector<64x128xbf16>, vector<128x1024xbf16>, vector<64x1024xf32> -> vector<64x1024xf32>
    %c0_4 = arith.constant 0 : index
    %c0_5 = arith.constant 0 : index
    %6 = vector.load %arg5[%c0_4, %c0_5] : memref<64x1xf32, #tpu.memory_space<vmem>>, vector<64x1xf32>
    %7 = vector.broadcast %6 : vector<64x1xf32> to vector<64x1024xf32>
    %8 = arith.addf %5, %7 : vector<64x1024xf32>
    %cst_6 = arith.constant 0.00999999977 : f32
    %9 = vector.broadcast %cst_6 : f32 to vector<64x1024xf32>
    %10 = arith.mulf %9, %8 : vector<64x1024xf32>
    %11 = arith.maximumf %8, %10 : vector<64x1024xf32>
    %c0_7 = arith.constant 0 : index
    %c0_8 = arith.constant 0 : index
    %12 = vector.load %arg6[%c0_7, %c0_8] : memref<64x1xf32, #tpu.memory_space<vmem>>, vector<64x1xf32>
    %13 = vector.broadcast %12 : vector<64x1xf32> to vector<64x1024xf32>
    %14 = arith.mulf %11, %13 : vector<64x1024xf32>
    %cst_9 = arith.constant dense<0.000000e+00> : vector<1024xf32>
    %15 = vector.multi_reduction <add>, %14, %cst_9 [0] : vector<64x1024xf32> to vector<1024xf32>
    %16 = vector.shape_cast %15 : vector<1024xf32> to vector<1x1024xf32>
    %c0_10 = arith.constant 0 : index
    %c0_11 = arith.constant 0 : index
    %17 = vector.load %arg3[%c0_10, %c0_11] : memref<1x1024xf32, #tpu.memory_space<vmem>>, vector<1x1024xf32>
    %18 = arith.addf %16, %17 : vector<1x1024xf32>
    %c1024_i32 = arith.constant 1024 : i32
    %19 = arith.muli %arg0, %c1024_i32 : i32
    %20 = tpu.iota {dimensions = array<i32: 1>} : vector<3x1024xi32>
    %21 = vector.broadcast %19 : i32 to vector<3x1024xi32>
    %22 = arith.addi %21, %20 : vector<3x1024xi32>
    %23 = tpu.iota {dimensions = array<i32: 0>} : vector<3x1xi32>
    %c0_i32_12 = arith.constant 0 : i32
    %24 = vector.broadcast %c0_i32_12 : i32 to vector<3x1xi32>
    %c0_i32_13 = arith.constant 0 : i32
    %25 = vector.broadcast %c0_i32_13 : i32 to vector<3x1xi32>
    %c0_i32_14 = arith.constant 0 : i32
    %26 = vector.broadcast %c0_i32_14 : i32 to vector<3x1xi32>
    %27 = arith.cmpi eq, %23, %26 : vector<3x1xi32>
    %c0_15 = arith.constant 0 : index
    %28 = memref.load %arg1[%c0_15] : memref<4xi32, #tpu.memory_space<smem>>
    %29 = vector.broadcast %28 : i32 to vector<3x1xi32>
    %30 = arith.select %27, %29, %24 : vector<3x1xi1>, vector<3x1xi32>
    %c0_i32_16 = arith.constant 0 : i32
    %31 = vector.broadcast %c0_i32_16 : i32 to vector<3x1xi32>
    %32 = arith.cmpi eq, %23, %31 : vector<3x1xi32>
    %c1 = arith.constant 1 : index
    %33 = memref.load %arg1[%c1] : memref<4xi32, #tpu.memory_space<smem>>
    %34 = vector.broadcast %33 : i32 to vector<3x1xi32>
    %35 = arith.select %32, %34, %25 : vector<3x1xi1>, vector<3x1xi32>
    %c1_i32 = arith.constant 1 : i32
    %36 = vector.broadcast %c1_i32 : i32 to vector<3x1xi32>
    %37 = arith.cmpi eq, %23, %36 : vector<3x1xi32>
    %c1_17 = arith.constant 1 : index
    %38 = memref.load %arg1[%c1_17] : memref<4xi32, #tpu.memory_space<smem>>
    %39 = vector.broadcast %38 : i32 to vector<3x1xi32>
    %40 = arith.select %37, %39, %30 : vector<3x1xi1>, vector<3x1xi32>
    %c1_i32_18 = arith.constant 1 : i32
    %41 = vector.broadcast %c1_i32_18 : i32 to vector<3x1xi32>
    %42 = arith.cmpi eq, %23, %41 : vector<3x1xi32>
    %c2 = arith.constant 2 : index
    %43 = memref.load %arg1[%c2] : memref<4xi32, #tpu.memory_space<smem>>
    %44 = vector.broadcast %43 : i32 to vector<3x1xi32>
    %45 = arith.select %42, %44, %35 : vector<3x1xi1>, vector<3x1xi32>
    %c2_i32 = arith.constant 2 : i32
    %46 = vector.broadcast %c2_i32 : i32 to vector<3x1xi32>
    %47 = arith.cmpi eq, %23, %46 : vector<3x1xi32>
    %c2_19 = arith.constant 2 : index
    %48 = memref.load %arg1[%c2_19] : memref<4xi32, #tpu.memory_space<smem>>
    %49 = vector.broadcast %48 : i32 to vector<3x1xi32>
    %50 = arith.select %47, %49, %40 : vector<3x1xi1>, vector<3x1xi32>
    %c2_i32_20 = arith.constant 2 : i32
    %51 = vector.broadcast %c2_i32_20 : i32 to vector<3x1xi32>
    %52 = arith.cmpi eq, %23, %51 : vector<3x1xi32>
    %c3 = arith.constant 3 : index
    %53 = memref.load %arg1[%c3] : memref<4xi32, #tpu.memory_space<smem>>
    %54 = vector.broadcast %53 : i32 to vector<3x1xi32>
    %55 = arith.select %52, %54, %45 : vector<3x1xi1>, vector<3x1xi32>
    %56 = vector.broadcast %50 : vector<3x1xi32> to vector<3x1024xi32>
    %57 = arith.cmpi sge, %22, %56 : vector<3x1024xi32>
    %58 = vector.broadcast %55 : vector<3x1xi32> to vector<3x1024xi32>
    %59 = arith.cmpi slt, %22, %58 : vector<3x1024xi32>
    %60 = arith.andi %57, %59 : vector<3x1024xi1>
    %61 = arith.extui %60 : vector<3x1024xi1> to vector<3x1024xi32>
    %62 = arith.sitofp %61 : vector<3x1024xi32> to vector<3x1024xf32>
    %cst_21 = arith.constant -1.000000e+30 : f32
    %63 = vector.shape_cast %18 : vector<1x1024xf32> to vector<1x1024xf32>
    %64 = vector.broadcast %63 : vector<1x1024xf32> to vector<3x1024xf32>
    %65 = vector.broadcast %cst_21 : f32 to vector<3x1024xf32>
    %66 = arith.select %60, %64, %65 : vector<3x1024xi1>, vector<3x1024xf32>
    %cst_22 = arith.constant dense<0xFF800000> : vector<3xf32>
    %67 = vector.multi_reduction <maximumf>, %66, %cst_22 [1] : vector<3x1024xf32> to vector<3xf32>
    %68 = vector.shape_cast %67 : vector<3xf32> to vector<3x1xf32>
    %c0_23 = arith.constant 0 : index
    %c0_24 = arith.constant 0 : index
    %69 = vector.load %arg10[%c0_23, %c0_24] : memref<3x1xf32, #tpu.memory_space<vmem>>, vector<3x1xf32>
    %70 = arith.maximumf %69, %68 : vector<3x1xf32>
    %71 = arith.subf %69, %70 : vector<3x1xf32>
    %72 = math.exp %71 : vector<3x1xf32>
    %c0_25 = arith.constant 0 : index
    %c0_26 = arith.constant 0 : index
    %73 = vector.load %arg10[%c0_25, %c0_26] : memref<3x1xf32, #tpu.memory_space<vmem>>, vector<3x1xf32>
    tpu.vector_store %arg10[%c0_25, %c0_26], %70 {strides = array<i32>} : memref<3x1xf32, #tpu.memory_space<vmem>>, vector<3x1xf32>,
    %74 = vector.broadcast %70 : vector<3x1xf32> to vector<3x1024xf32>
    %75 = arith.mulf %62, %74 : vector<3x1024xf32>
    %cst_27 = arith.constant dense<0.000000e+00> : vector<1024xf32>
    %76 = vector.multi_reduction <add>, %75, %cst_27 [0] : vector<3x1024xf32> to vector<1024xf32>
    %77 = vector.shape_cast %76 : vector<1024xf32> to vector<1x1024xf32>
    %78 = arith.subf %18, %77 : vector<1x1024xf32>
    %79 = math.exp %78 : vector<1x1024xf32>
    %80 = vector.broadcast %79 : vector<1x1024xf32> to vector<3x1024xf32>
    %81 = arith.mulf %62, %80 : vector<3x1024xf32>
    %c0_28 = arith.constant 0 : index
    %c0_29 = arith.constant 0 : index
    %82 = vector.load %arg11[%c0_28, %c0_29] : memref<3x1xf32, #tpu.memory_space<vmem>>, vector<3x1xf32>
    %83 = arith.mulf %72, %82 : vector<3x1xf32>
    %cst_30 = arith.constant dense<0.000000e+00> : vector<3xf32>
    %84 = vector.multi_reduction <add>, %81, %cst_30 [1] : vector<3x1024xf32> to vector<3xf32>
    %85 = vector.shape_cast %84 : vector<3xf32> to vector<3x1xf32>
    %86 = arith.addf %83, %85 : vector<3x1xf32>
    %c0_31 = arith.constant 0 : index
    %c0_32 = arith.constant 0 : index
    %87 = vector.load %arg11[%c0_31, %c0_32] : memref<3x1xf32, #tpu.memory_space<vmem>>, vector<3x1xf32>
    tpu.vector_store %arg11[%c0_31, %c0_32], %86 {strides = array<i32>} : memref<3x1xf32, #tpu.memory_space<vmem>>, vector<3x1xf32>,
    %88 = vector.extract_strided_slice %3 {offsets = [0, 0], sizes = [32, 1024], strides = [1, 1]} : vector<128x1024xbf16> to vector<32x1024xbf16>
    %89 = arith.extf %88 : vector<32x1024xbf16> to vector<32x1024xf32>
    %c0_33 = arith.constant 0 : index
    %c0_34 = arith.constant 0 : index
    %90 = vector.load %arg12[%c0_33, %c0_34] : memref<3x32xf32, #tpu.memory_space<vmem>>, vector<3x32xf32>
    %91 = vector.broadcast %72 : vector<3x1xf32> to vector<3x32xf32>
    %92 = arith.mulf %91, %90 : vector<3x32xf32>
    %cst_35 = arith.constant dense<0.000000e+00> : vector<3x32xf32>
    %93 = tpu.matmul %81, %89, %cst_35 {dimension_numbers = #tpu.dot_dimension_numbers<[1], [1], [0], [0], [0, 0, 1, 0], [], []>} : vector<3x1024xf32>, vector<32x1024xf32>, vector<3x32xf32> -> vector<3x32xf32>
    %94 = arith.addf %92, %93 : vector<3x32xf32>
    %c0_36 = arith.constant 0 : index
    %c0_37 = arith.constant 0 : index
    %95 = vector.load %arg12[%c0_36, %c0_37] : memref<3x32xf32, #tpu.memory_space<vmem>>, vector<3x32xf32>
    tpu.vector_store %arg12[%c0_36, %c0_37], %94 {strides = array<i32>} : memref<3x32xf32, #tpu.memory_space<vmem>>, vector<3x32xf32>,
    %c2_i32_38 = arith.constant 2 : i32
    %96 = arith.cmpi eq, %arg0, %c2_i32_38 : i32
    %97 = arith.extui %96 : i1 to i32
    %c0_i32_39 = arith.constant 0 : i32
    %98 = arith.cmpi ne, %97, %c0_i32_39 : i32
    scf.if %98 {
      %c0_40 = arith.constant 0 : index
      %c0_41 = arith.constant 0 : index
      %99 = vector.load %arg11[%c0_40, %c0_41] : memref<3x1xf32, #tpu.memory_space<vmem>>, vector<3x1xf32>
      %cst_42 = arith.constant 1.000000e-30 : f32
      %100 = vector.broadcast %cst_42 : f32 to vector<3x1xf32>
      %101 = arith.maximumf %99, %100 : vector<3x1xf32>
      %c0_43 = arith.constant 0 : index
      %c0_44 = arith.constant 0 : index
      %102 = vector.load %arg12[%c0_43, %c0_44] : memref<3x32xf32, #tpu.memory_space<vmem>>, vector<3x32xf32>
      %103 = vector.broadcast %101 : vector<3x1xf32> to vector<3x32xf32>
      %104 = arith.divf %102, %103 : vector<3x32xf32>
      %c0_45 = arith.constant 0 : index
      %c0_46 = arith.constant 0 : index
      %105 = vector.load %arg7[%c0_45, %c0_46] : memref<32x32xf32, #tpu.memory_space<vmem>>, vector<32x32xf32>
      %cst_47 = arith.constant dense<0.000000e+00> : vector<3x32xf32>
      %106 = tpu.matmul %104, %105, %cst_47 {dimension_numbers = #tpu.dot_dimension_numbers<[1], [0], [0], [1], [0, 0, 1, 1], [], []>} : vector<3x32xf32>, vector<32x32xf32>, vector<3x32xf32> -> vector<3x32xf32>
      %c0_48 = arith.constant 0 : index
      %c0_49 = arith.constant 0 : index
      %107 = vector.load %arg8[%c0_48, %c0_49] : memref<1x32xf32, #tpu.memory_space<vmem>>, vector<1x32xf32>
      %108 = vector.broadcast %107 : vector<1x32xf32> to vector<3x32xf32>
      %109 = arith.addf %106, %108 : vector<3x32xf32>
      %c0_50 = arith.constant 0 : index
      %c0_51 = arith.constant 0 : index
      %110 = vector.load %arg9[%c0_50, %c0_51] : memref<3x32xf32, #tpu.memory_space<vmem>>, vector<3x32xf32>
      tpu.vector_store %arg9[%c0_50, %c0_51], %109 {strides = array<i32>} : memref<3x32xf32, #tpu.memory_space<vmem>>, vector<3x32xf32>,
    } else {
    }
    return
  }
  func.func @transform_0(%arg0: i32, %arg1: memref<4xi32, #tpu.memory_space<smem>>) -> (i32, i32) {
    %c0_i32 = arith.constant 0 : i32
    %c0_i32_0 = arith.constant 0 : i32
    return %c0_i32, %arg0 : i32, i32
  }
  func.func @transform_1(%arg0: i32, %arg1: memref<4xi32, #tpu.memory_space<smem>>) -> (i32, i32) {
    %c0_i32 = arith.constant 0 : i32
    %c0_i32_0 = arith.constant 0 : i32
    return %c0_i32, %arg0 : i32, i32
  }
  func.func @transform_2(%arg0: i32, %arg1: memref<4xi32, #tpu.memory_space<smem>>) -> (i32, i32) {
    %c0_i32 = arith.constant 0 : i32
    %c0_i32_0 = arith.constant 0 : i32
    %c0_i32_1 = arith.constant 0 : i32
    return %c0_i32, %c0_i32_0 : i32, i32
  }
  func.func @transform_3(%arg0: i32, %arg1: memref<4xi32, #tpu.memory_space<smem>>) -> (i32, i32) {
    %c0_i32 = arith.constant 0 : i32
    %c0_i32_0 = arith.constant 0 : i32
    %c0_i32_1 = arith.constant 0 : i32
    return %c0_i32, %c0_i32_0 : i32, i32
  }
  func.func @transform_4(%arg0: i32, %arg1: memref<4xi32, #tpu.memory_space<smem>>) -> (i32, i32) {
    %c0_i32 = arith.constant 0 : i32
    %c0_i32_0 = arith.constant 0 : i32
    %c0_i32_1 = arith.constant 0 : i32
    return %c0_i32, %c0_i32_0 : i32, i32
  }
  func.func @transform_5(%arg0: i32, %arg1: memref<4xi32, #tpu.memory_space<smem>>) -> (i32, i32) {
    %c0_i32 = arith.constant 0 : i32
    %c0_i32_0 = arith.constant 0 : i32
    %c0_i32_1 = arith.constant 0 : i32
    return %c0_i32, %c0_i32_0 : i32, i32
  }
  func.func @transform_6(%arg0: i32, %arg1: memref<4xi32, #tpu.memory_space<smem>>) -> (i32, i32) {
    %c0_i32 = arith.constant 0 : i32
    %c0_i32_0 = arith.constant 0 : i32
    %c0_i32_1 = arith.constant 0 : i32
    return %c0_i32, %c0_i32_0 : i32, i32
  }
  func.func @transform_7(%arg0: i32, %arg1: memref<4xi32, #tpu.memory_space<smem>>) -> (i32, i32) {
    %c0_i32 = arith.constant 0 : i32
    %c0_i32_0 = arith.constant 0 : i32
    %c0_i32_1 = arith.constant 0 : i32
    return %c0_i32, %c0_i32_0 : i32, i32
  }
}

</mosaic_0001>

<bundles_post_ra>
// kernel: tpu_custom_call.1
= control target key start
LH: loop header
LB: loop body
LE: loop exit
PB: predicated region body
PF: predicated region fallthrough
CT: control target
= control target key end

     0   :  { %s3608_s0 = inlined_call_operand.vmem [shape: s32[4], index: 0, kind: input, shape index: {}]   ;;  %s3609_s1 = inlined_call_operand.hbm [shape: bf16[128,3072], index: 1, kind: input, shape index: {}]   ;;  %s3610_s2 = inlined_call_operand.vmem [shape: f32[1,3072], index: 2, kind: input, shape index: {}]   ;;  %s3611_s3 = inlined_call_operand.vmem [shape: bf16[64,128], index: 3, kind: input, shape index: {}]   ;;  %s3612_s4 = inlined_call_operand.vmem [shape: f32[64,1], index: 4, kind: input, shape index: {}]   ;;  %s3613_s5 = inlined_call_operand.vmem [shape: f32[64,1], index: 5, kind: input, shape index: {}]   ;;  %s3614_s6 = inlined_call_operand.vmem [shape: f32[32,32], index: 6, kind: input, shape index: {}]   ;;  %s3615_s7 = inlined_call_operand.vmem [shape: f32[1,32], index: 7, kind: input, shape index: {}]   ;;  %s3616_s8 = inlined_call_operand.hbm [shape: f32[3,32], index: 8, kind: output, shape index: {}]  }
   0x1   :  { %s13_s29 = sshll.u32 %s3608_s0, 4  ;;  %s14_s29 = int_to_ptr.vmem [resolvable:$true] %s13_s29 }
   0x2   :  { %s2510_s30 = scalar_lea.vmem %s14_s29, 16  ;;  %p2515_p1 = scmp.lt.s32.totalorder %s14_s29, %s14_s29 }
   0x3   :  { %p2511_p0 = scmp.ne.s32.totalorder %s14_s29, %s2510_s30  ;;  %p2516_p2 = scmp.lt.s32.totalorder %s2510_s30, %s2510_s30 }
   0x5   :  { %p2517_p3 = por %p2516_p2, %p2515_p1 }
   0x7   :  { %p2518_p4 = pnand %p2517_p3, %p2511_p0 }
   0x9   :  { %2521 = shalt.err (!%p2518_p4)  }
   0xa   :  { %s2620_s9 = smov [#allocation6]  }
   0xb   :  { %16 = dma.vmem_to_smem %s14_s29, 16, %s2620_s9, [#allocation5] }
   0xc   :  { %2594 = dma.done.wait [#allocation5], 16 }
   0xd   :  { %2595 = vsyncadd [#allocation5], 4294967280 }
   0xe   :  { %18 = sfence }
   0xf   :  { %19 = vsyncpa [#allocation8], 0 }
  0x10   :  { %21 = vsyncpa [#allocation8 + $0x1], 0 }
  0x11   :  { %22 = vsyncpa [#allocation9], 0  ;;  %s2682_s10 = smov 0   ;;  %s2684_s11 = smov 0  }
  0x12   :  { %s2686_s0 = smov 0   ;;  %s2688_s12 = smov 0  }
  0x13 LB: > { %s2701_s13 = sadd.s32 4294967295, %s2618_s12   ;;  %s2704_s14 = sadd.s32 1, %s2618_s12   ;;  %s2618_s12 = sphi %s2688_s12, %s3724_s12   ;;  %s2614_s0 = sphi %s2686_s0, %s3723_s0   ;;  %s2610_s11 = sphi %s2684_s11, %s3722_s11   ;;  %s2606_s10 = sphi %s2682_s10, %s3721_s10  }
  0x14   : > { %s32_s15 = ssub.s32 %s2618_s12, %s2704_s14  ;;  %s35_s16 = sadd.s32 1, %s2614_s0 }
  0x15   : > { %p33_p5 = scmp.eq.s32.totalorder %s32_s15, 0  ;;  %p42_p6 = scmp.ne.s32.totalorder %s2614_s0, %s2610_s11 }
  0x16   : > { %p43_p7 = scmp.eq.s32.totalorder %s2618_s12, 0  ;;  %p48_p8 = scmp.ne.s32.totalorder %s2610_s11, %s2606_s10 }
  0x17   : > { %s2714_s17 = scalar_select %p33_p5, %s2614_s0, %s35_s16  }
  0x18   : > { %p44_p9 = por %p43_p7, %p42_p6  ;;  %p49_p10 = scmp.eq.s32.totalorder %s2701_s13, 0 }
  0x19   : > { %p2435_p11 = scmp.lt.s32.totalorder %s2618_s12, 3  ;;  %s239_s19 = sand.u32 1, %s2614_s0  }
  0x1a   : > { %p2718_p12 = por %p49_p10, %p48_p8  ;;  %s2260_s20 = sshll.u32 %s239_s19, 9 }
  0x1b   : > { %s2354_s21 = sshll.u32 %s2618_s12, 9  ;;  %s243_s25 = scalar_lea.vmem [#allocation7], %s2260_s20 }
  0x1c   : > { %s2727_s24 = scalar_lea.hbm %s3609_s1, %s2354_s21  ;;  %s250_s26 = sshll.u32 %s243_s25, 4  ;;  %s2729_s26 = int_to_ptr.vmem [resolvable:$true] %s250_s26 }
  0x1d   : > { %p2731_p13 = pnand %p2435_p11, %p44_p9  ;;  %s2735_s28 = scalar_lea.sflag [#allocation8], %s239_s19 }
  0x1e   : > { %s2522_s29 = scalar_lea.hbm %s2727_s24, 8192  ;;  %s2527_s10 = scalar_lea.hbm %s3609_s1, 24576 }
  0x1f   : > { %p2523_p0 = scmp.ne.s32.totalorder %s2727_s24, %s2522_s29  ;;  %p2524_p1 = pneg %p2731_p13 }
  0x20   : > { %p2528_p4 = scmp.lt.u32.totalorder %s2727_s24, %s3609_s1  ;;  %p2529_p5 = scmp.lt.u32.totalorder %s2527_s10, %s2522_s29 }
  0x21   : > { %p2525_p2 = pnand %p2524_p1, %p2523_p0  ;;  %p2531_p7 = scmp.lt.u32.totalorder %s2522_s29, %s2727_s24 }
  0x22   : > { %p2530_p6 = por %p2529_p5, %p2528_p4 }
  0x23   : > { %p2526_p3 = pneg %p2525_p2 }
  0x24   : > { %p2532_p8 = por %p2531_p7, %p2530_p6 }
  0x26   : > { %p2533_p9 = pnand %p2532_p8, %p2526_p3 }
  0x28   : > { %2536 = shalt.err (!%p2533_p9)
}
  0x29   : > { %s2537_s19 = scalar_lea.vmem %s2729_s26, 8192  ;;  %s2621_s20 = smov [#allocation7]  }
  0x2a   : > { %p2538_p10 = scmp.ne.s32.totalorder %s2729_s26, %s2537_s19  ;;  %s2542_s21 = sshll.u32 %s2621_s20, 4  ;;  %s2543_s21 = int_to_ptr.vmem [resolvable:$false] %s2542_s21 }
  0x2b   : > { %s2544_s22 = scalar_lea.vmem %s2543_s21, 16384  ;;  %p2545_p2 = scmp.lt.s32.totalorder %s2729_s26, %s2543_s21 }
  0x2c   : > { %p2540_p11 = pnand %p2538_p10, %p2524_p1  ;;  %p2546_p4 = scmp.lt.s32.totalorder %s2544_s22, %s2537_s19 }
  0x2e   : > { %p2541_p0 = pneg %p2540_p11  ;;  %p2547_p5 = por %p2546_p4, %p2545_p2 }
  0x30   : > { %p2548_p6 = pnand %p2547_p5, %p2541_p0 }
  0x32   : > { %2551 = shalt.err (!%p2548_p6)
}
  0x33   : > { %s2622_s23 = smov 1536   ;;  %s2623_s25 = smov 512  }
  0x34   : > { %s2624_s29 = smov 32   ;;  %p2263_p1 = scmp.ge.s32.totalorder %s2618_s12, 1 }
  0x35   : > { %2434 = dma.hbm_to_vmem [thread:$0]  (!%p2731_p13), %s2727_s24, 8192, %s2729_s26, %s2735_s28, %s2622_s23, %s2623_s25, %s2624_s29  }
  0x36   : > { %p266_p3 = scmp.lt.s32.totalorder %s2618_s12, 4 }
  0x38   : > { %p267_p7 = pnand %p2263_p1, %p266_p3 }
  0x3a   : > { %270 = sbr.rel (%p267_p7) target bundleno = 1298 (0x512), region = 48 }
  0x41   : > { %s272_s30 = sand.u32 1, %s2610_s11  }
  0x42   : > { %s2264_s9 = sshll.u32 %s272_s30, 9  ;;  %s273_s10 = scalar_lea.sflag [#allocation8], %s272_s30 }
  0x43   : > { %s2766_s15 = scalar_lea.vmem [#allocation7], %s2264_s9 }
  0x44   : > { %2597 = dma.done.wait (%p2718_p12), %s273_s10, 8192  }
  0x45   : > { %2599 = vsyncadd (%p2718_p12), %s273_s10, 4294959104  ;;  %s2265_s16 = sshll.u32 %s2701_s13, 3  ;;  %p2266_p13 = scmp.ne.s32.totalorder %s2701_s13, 0 }
  0x46   : > { %p308_p8 = scmp.lt.s32.totalorder %s2265_s16, 23  ;;  %vm317_vm0 = vcmask (!%p2266_p13), 2048   ;;  %vm320_vm1 = vcmask (!%p2266_p13), 256000   ;;  %v2625_v0 = vmov (!%p2266_p13), -1e+30   ;;  %v2626_v1 = vmov (!%p2266_p13), 0.0  }
  0x47   : > { %316 = sbr.rel (%p2266_p13) target bundleno = 78 (0x4e), region = 56  ;;  %318 = vst.msk [vmem:[#allocation2] sm:$0x7] (!%p2266_p13), %vm317_vm0, %v2625_v0  ;;  %319 = vst.msk [vmem:[#allocation3] sm:$0x7] (!%p2266_p13), %vm317_vm0, %v2626_v1 }
  0x48   : > { %s3726_s16 = smov (!%p308_p8, %s2265_s16), 23  ;;  %321 = vst.msk [vmem:[#allocation4] sm:$0x7] (!%p2266_p13), %vm320_vm1, %v2626_v1 }
  0x49   : > { %s310_s26 = scalar_lea.vmem %s3610_s2, %s3726_s16 }
  0x4e PF: > { %v322_v2 = vld [vmem:[%s2766_s15] sm:$0xff]  ;;  %v323_v4 = vld [vmem:[%s2766_s15 + $0x8] sm:$0xff]  ;;  %v2627_v10 = vmov 0   ;;  %v394_v0 = vld [vmem:[%s3612_s4] sm:$0xff]  ;;  %s3004_s29 = sld [smem:[#allocation6]]  ;;  %s3006_s30 = sld [smem:[#allocation6 + $0x1]] }
  0x4f   : > { %v326_v3 = vld [vmem:[%s2766_s15 + $0x20] sm:$0xff]  ;;  %v327_v6 = vld [vmem:[%s2766_s15 + $0x28] sm:$0xff]  ;;  %818 = vmatprep.mubr.bf16.mxu0 %v2627_v10  ;;  %891 = vmatprep.mubr.bf16.mxu1 %v2627_v10  ;;  %s3022_s12 = sld [smem:[#allocation6 + $0x2]]  ;;  %s2335_s24 = sshll.u32 %s2701_s13, 10 }
  0x50   : > { %v2783_v5 = vcombine.high %v322_v2, %v326_v3  ;;  %v2786_v7 = vcombine.low %v322_v2, %v326_v3  ;;  %v330_v8 = vld [vmem:[%s2766_s15 + $0x40] sm:$0xff]  ;;  %v2792_v11 = vcombine.high %v323_v4, %v327_v6  ;;  %v2794_v12 = vcombine.low %v323_v4, %v327_v6  ;;  %v331_v14 = vld [vmem:[%s2766_s15 + $0x48] sm:$0xff]  ;;  %2483 = vset.pattern.permute.xlu0 %v2627_v10  ;;  %v324_v3 = vld [vmem:[%s2766_s15 + $0x10] sm:$0xff]  ;;  %s3033_s16 = sld [smem:[#allocation6 + $0x3]]  ;;  %p2347_p12 = scmp.ne.s32.totalorder %s2701_s13, 2 }
  0x51   : > { %v334_v9 = vld [vmem:[%s2766_s15 + $0x60] sm:$0xff]  ;;  %v335_v15 = vld [vmem:[%s2766_s15 + $0x68] sm:$0xff]  ;;  %2484 = vset.pattern.permute.xlu1 %v2627_v10  ;;  %v328_v4 = vld [vmem:[%s2766_s15 + $0x30] sm:$0xff]  ;;  %404 = vperm.xlu0 %2483, %v394_v0  }
  0x52   : > { %v2796_v13 = vcombine.high %v330_v8, %v334_v9  ;;  %v338_v16 = vld [vmem:[%s2766_s15 + $0x80] sm:$0xff]  ;;  %786 = vmatprep.subr.bf16.mxu0 %v2783_v5  ;;  %v2803_v17 = vcombine.high %v331_v14, %v335_v15  ;;  %v339_v19 = vld [vmem:[%s2766_s15 + $0x88] sm:$0xff]  ;;  %859 = vmatprep.subr.bf16.mxu1 %v2792_v11  ;;  %v2811_v21 = vcombine.low %v330_v8, %v334_v9  ;;  %v325_v6 = vld [vmem:[%s2766_s15 + $0x18] sm:$0xff] }
  0x53   : > { %v342_v18 = vld [vmem:[%s2766_s15 + $0xa0] sm:$0xff]  ;;  %v343_v20 = vld [vmem:[%s2766_s15 + $0xa8] sm:$0xff]  ;;  %787 = vmatpush1.bf16.msra.mxu0 %v2786_v7  ;;  %860 = vmatpush1.bf16.msra.mxu1 %v2794_v12  ;;  %v2815_v22 = vcombine.low %v331_v14, %v335_v15  ;;  %v329_v8 = vld [vmem:[%s2766_s15 + $0x38] sm:$0xff] }
  0x54   : > { %788 = vmatprep.subr.bf16.mxu0 %v2796_v13  ;;  %v2288_v23 = vcombine.high %v338_v16, %v342_v18  ;;  %861 = vmatprep.subr.bf16.mxu1 %v2803_v17  ;;  %v2290_v24 = vcombine.high %v339_v19, %v343_v20  ;;  %v346_v25 = vld [vmem:[%s2766_s15 + $0xc0] sm:$0xff]  ;;  %v347_v27 = vld [vmem:[%s2766_s15 + $0xc8] sm:$0xff]  ;;  %v2287_v29 = vcombine.low %v338_v16, %v342_v18  ;;  %v368_v0 = vld [vmem:[%s2766_s15 + $0x170] sm:$0xff] }
  0x55   : > { %v350_v26 = vld [vmem:[%s2766_s15 + $0xe0] sm:$0xff]  ;;  %v351_v28 = vld [vmem:[%s2766_s15 + $0xe8] sm:$0xff]  ;;  %v2289_v30 = vcombine.low %v339_v19, %v343_v20  ;;  %v2856_v18 = vcombine.high %v324_v3, %v328_v4  ;;  %v2861_v19 = vld [vmem:[%s3611_s3] sm:$0xff]   ;;  %v2863_v20 = vcombine.high %v325_v6, %v329_v8 }
  0x56   : > { %v2296_v31 = vcombine.high %v346_v25, %v350_v26  ;;  %v2298_v32 = vcombine.high %v347_v27, %v351_v28  ;;  %v354_v33 = vld [vmem:[%s2766_s15 + $0x100] sm:$0xff]  ;;  %v355_v35 = vld [vmem:[%s2766_s15 + $0x108] sm:$0xff]  ;;  %v2295_v37 = vcombine.low %v346_v25, %v350_v26  ;;  %v2297_v38 = vcombine.low %v347_v27, %v351_v28  ;;  %v333_v25 = vld [vmem:[%s2766_s15 + $0x58] sm:$0xff] }
  0x57   : > { %789 = vmatpush1.bf16.msra.mxu0 %v2811_v21  ;;  %862 = vmatpush1.bf16.msra.mxu1 %v2815_v22  ;;  %v358_v34 = vld [vmem:[%s2766_s15 + $0x120] sm:$0xff]  ;;  %v359_v36 = vld [vmem:[%s2766_s15 + $0x128] sm:$0xff]  ;;  %v337_v26 = vld [vmem:[%s2766_s15 + $0x78] sm:$0xff]  ;;  %v2872_v28 = vcombine.low %v324_v3, %v328_v4 }
  0x58   : > { %790 = vmatprep.subr.bf16.mxu0 %v2288_v23  ;;  %863 = vmatprep.subr.bf16.mxu1 %v2290_v24  ;;  %v2304_v39 = vcombine.high %v354_v33, %v358_v34  ;;  %v362_v40 = vld [vmem:[%s2766_s15 + $0x140] sm:$0xff]  ;;  %v2306_v41 = vcombine.high %v355_v35, %v359_v36  ;;  %v363_v43 = vld [vmem:[%s2766_s15 + $0x148] sm:$0xff]  ;;  %v2303_v45 = vcombine.low %v354_v33, %v358_v34  ;;  %v332_v23 = vld [vmem:[%s2766_s15 + $0x50] sm:$0xff] }
  0x59   : > { %v366_v42 = vld [vmem:[%s2766_s15 + $0x160] sm:$0xff]  ;;  %v367_v44 = vld [vmem:[%s2766_s15 + $0x168] sm:$0xff]  ;;  %v2305_v46 = vcombine.low %v355_v35, %v359_v36  ;;  %v336_v24 = vld [vmem:[%s2766_s15 + $0x70] sm:$0xff]  ;;  %3635 = vst [vmem:[#allocation14_spill] sm:$0xff] %v2872_v28 }
  0x5a   : > { %v2312_v47 = vcombine.high %v362_v40, %v366_v42  ;;  %v370_v48 = vld [vmem:[%s2766_s15 + $0x180] sm:$0xff]  ;;  %v2314_v49 = vcombine.high %v363_v43, %v367_v44  ;;  %v371_v51 = vld [vmem:[%s2766_s15 + $0x188] sm:$0xff]  ;;  %v2311_v53 = vcombine.low %v362_v40, %v366_v42  ;;  %v2313_v54 = vcombine.low %v363_v43, %v367_v44  ;;  %v398_v27 = vld [vmem:[%s3612_s4 + $0x20] sm:$0xff] }
  0x5b   : > { %791 = vmatpush1.bf16.msra.mxu0 %v2287_v29  ;;  %864 = vmatpush1.bf16.msra.mxu1 %v2289_v30  ;;  %v374_v50 = vld [vmem:[%s2766_s15 + $0x1a0] sm:$0xff]  ;;  %v375_v52 = vld [vmem:[%s2766_s15 + $0x1a8] sm:$0xff]  ;;  %v1206_v29 = vld [vmem:[%s3613_s5] sm:$0xff]  ;;  %v2878_v30 = vcombine.low %v325_v6, %v329_v8 }
  0x5c   : > { %792 = vmatprep.subr.bf16.mxu0 %v2296_v31  ;;  %865 = vmatprep.subr.bf16.mxu1 %v2298_v32  ;;  %v2320_v55 = vcombine.high %v370_v48, %v374_v50  ;;  %v2322_v56 = vcombine.high %v371_v51, %v375_v52  ;;  %v378_v57 = vld [vmem:[%s2766_s15 + $0x1c0] sm:$0xff]  ;;  %v379_v59 = vld [vmem:[%s2766_s15 + $0x1c8] sm:$0xff]  ;;  %v2319_v61 = vcombine.low %v370_v48, %v374_v50  ;;  %v340_v33 = vld [vmem:[%s2766_s15 + $0x90] sm:$0xff] }
  0x5d   : > { %v382_v58 = vld [vmem:[%s2766_s15 + $0x1e0] sm:$0xff]  ;;  %v383_v60 = vld [vmem:[%s2766_s15 + $0x1e8] sm:$0xff]  ;;  %v2321_v62 = vcombine.low %v371_v51, %v375_v52  ;;  %3636 = vst [vmem:[#allocation15_spill] sm:$0xff] %v2878_v30  ;;  %v2880_v31 = vcombine.high %v332_v23, %v336_v24  ;;  %v2883_v32 = vcombine.high %v333_v25, %v337_v26  ;;  %v344_v34 = vld [vmem:[%s2766_s15 + $0xb0] sm:$0xff] }
  0x5e   : > { %v2328_v63 = vcombine.high %v378_v57, %v382_v58  ;;  %v396_v1 = vld [vmem:[%s3612_s4 + $0x10] sm:$0xff]  ;;  %v2330_v2 = vcombine.high %v379_v59, %v383_v60  ;;  %v395_v9 = vld [vmem:[%s3612_s4 + $0x8] sm:$0xff]  ;;  %v2327_v14 = vcombine.low %v378_v57, %v382_v58  ;;  %v397_v15 = vld [vmem:[%s3612_s4 + $0x18] sm:$0xff]  ;;  %v2329_v16 = vcombine.low %v379_v59, %v383_v60 }
  0x5f   : > { %793 = vmatpush1.bf16.msra.mxu0 %v2295_v37  ;;  %866 = vmatpush1.bf16.msra.mxu1 %v2297_v38  ;;  %3637 = vst [vmem:[#allocation16_spill] sm:$0xff] %v2880_v31  ;;  %3638 = vst [vmem:[#allocation17_spill] sm:$0xff] %v2883_v32  ;;  %v341_v35 = vld [vmem:[%s2766_s15 + $0x98] sm:$0xff]  ;;  %v2892_v37 = vcombine.low %v332_v23, %v336_v24  ;;  %v2292_v40 = vcombine.high %v340_v33, %v344_v34  ;;  %v348_v43 = vld [vmem:[%s2766_s15 + $0xd0] sm:$0xff] }
  0x60   : > { %794 = vmatprep.subr.bf16.mxu0 %v2304_v39  ;;  %867 = vmatprep.subr.bf16.mxu1 %v2306_v41  ;;  %v345_v36 = vld [vmem:[%s2766_s15 + $0xb8] sm:$0xff]  ;;  %v2899_v39 = vcombine.low %v333_v25, %v337_v26  ;;  %v352_v44 = vld [vmem:[%s2766_s15 + $0xf0] sm:$0xff]  ;;  %v2291_v48 = vcombine.low %v340_v33, %v344_v34  ;;  %v400_v58 = vld [vmem:[%s3612_s4 + $0x30] sm:$0xff] }
  0x61   : > { %414 = vperm.xlu1 %2484, %v396_v1   ;;  %409 = vperm.xlu0 %2483, %v395_v9   ;;  %3639 = vst [vmem:[#allocation18_spill] sm:$0xff] %v2892_v37  ;;  %v1207_v38 = vld [vmem:[%s3613_s5 + $0x8] sm:$0xff]  ;;  %v2294_v42 = vcombine.high %v341_v35, %v345_v36  ;;  %v2293_v50 = vcombine.low %v341_v35, %v345_v36  ;;  %v2940_v1 = vld [vmem:[%s3611_s3 + $0x10] sm:$0xff]   ;;  %v401_v6 = vld [vmem:[%s3612_s4 + $0x38] sm:$0xff] }
  0x62   : > { %3640 = vst [vmem:[#allocation19_spill] sm:$0xff] %v2899_v39  ;;  %v399_v41 = vld [vmem:[%s3612_s4 + $0x28] sm:$0xff]  ;;  %v2300_v51 = vcombine.high %v348_v43, %v352_v44  ;;  %v2299_v57 = vcombine.low %v348_v43, %v352_v44  ;;  %v1210_v26 = vld [vmem:[%s3613_s5 + $0x20] sm:$0xff]  ;;  %v1212_v43 = vld [vmem:[%s3613_s5 + $0x30] sm:$0xff] }
  0x63   : > { %795 = vmatpush1.bf16.msra.mxu0 %v2303_v45  ;;  %868 = vmatpush1.bf16.msra.mxu1 %v2305_v46  ;;  %v2912_v45 = vld [vmem:[%s3611_s3 + $0x8] sm:$0xff]   ;;  %v380_v35 = vld [vmem:[%s2766_s15 + $0x1d0] sm:$0xff] }
  0x64   : > { %796 = vmatprep.subr.bf16.mxu0 %v2312_v47  ;;  %869 = vmatprep.subr.bf16.mxu1 %v2314_v49  ;;  %v349_v46 = vld [vmem:[%s2766_s15 + $0xd8] sm:$0xff]  ;;  %v1208_v49 = vld [vmem:[%s3613_s5 + $0x10] sm:$0xff]  ;;  %v384_v36 = vld [vmem:[%s2766_s15 + $0x1f0] sm:$0xff] }
  0x65   : > { %419 = vperm.xlu1 %2484, %v397_v15   ;;  %424 = vperm.xlu0 %2483, %v398_v27   ;;  %v353_v47 = vld [vmem:[%s2766_s15 + $0xf8] sm:$0xff]  ;;  %v372_v15 = vld [vmem:[%s2766_s15 + $0x190] sm:$0xff] }
  0x66   : > { %v2302_v52 = vcombine.high %v349_v46, %v353_v47  ;;  %v2301_v59 = vcombine.low %v349_v46, %v353_v47  ;;  %v369_v3 = vld [vmem:[%s2766_s15 + $0x178] sm:$0xff]  ;;  %v2332_v46 = vcombine.high %v380_v35, %v384_v36 }
  0x67   : > { %797 = vmatpush1.bf16.msra.mxu0 %v2311_v53  ;;  %870 = vmatpush1.bf16.msra.mxu1 %v2313_v54  ;;  %v356_v53 = vld [vmem:[%s2766_s15 + $0x110] sm:$0xff]  ;;  %v373_v23 = vld [vmem:[%s2766_s15 + $0x198] sm:$0xff] }
  0x68   : > { %798 = vmatprep.subr.bf16.mxu0 %v2320_v55  ;;  %871 = vmatprep.subr.bf16.mxu1 %v2322_v56  ;;  %v360_v54 = vld [vmem:[%s2766_s15 + $0x130] sm:$0xff]  ;;  %v357_v55 = vld [vmem:[%s2766_s15 + $0x118] sm:$0xff] }
  0x69   : > { %1216 = vperm.xlu1 %2484, %v1206_v29   ;;  %1221 = vperm.xlu0 %2483, %v1207_v38   ;;  %v361_v56 = vld [vmem:[%s2766_s15 + $0x138] sm:$0xff]  ;;  %v2308_v60 = vcombine.high %v356_v53, %v360_v54  ;;  %v2307_v4 = vcombine.low %v356_v53, %v360_v54  ;;  %v2488_v38 = vld [vmem:[%s3611_s3 + $0x18] sm:$0xff]  }
  0x6a   : > { %v2309_v8 = vcombine.low %v357_v55, %v361_v56  ;;  %v377_v24 = vld [vmem:[%s2766_s15 + $0x1b8] sm:$0xff] }
  0x6b   : > { %799 = vmatpush1.bf16.msra.mxu0 %v2319_v61  ;;  %872 = vmatpush1.bf16.msra.mxu1 %v2321_v62  ;;  %v1209_v61 = vld [vmem:[%s3613_s5 + $0x18] sm:$0xff]  ;;  %v2310_v62 = vcombine.high %v357_v55, %v361_v56  ;;  %v1211_v33 = vld [vmem:[%s3613_s5 + $0x28] sm:$0xff]  ;;  %v2326_v34 = vcombine.high %v373_v23, %v377_v24  ;;  %v2325_v44 = vcombine.low %v373_v23, %v377_v24  ;;  %v1482_v55 = vstv %s2335_s24 }
  0x6c   : > { %800 = vmatprep.subr.bf16.mxu0 %v2328_v63  ;;  %873 = vmatprep.subr.bf16.mxu1 %v2330_v2  ;;  %v364_v63 = vld [vmem:[%s2766_s15 + $0x150] sm:$0xff]  ;;  %v365_v2 = vld [vmem:[%s2766_s15 + $0x158] sm:$0xff]  ;;  %v1495_v56 = vstv %s3004_s29 }
  0x6d   : > { %429 = vperm.xlu1 %2484, %v399_v41   ;;  %1226 = vperm.xlu0 %2483, %v1208_v49   ;;  %v2316_v9 = vcombine.high %v364_v63, %v368_v0  ;;  %v2315_v25 = vcombine.low %v364_v63, %v368_v0  ;;  %v2317_v27 = vcombine.low %v365_v2, %v369_v3  ;;  %v385_v41 = vld [vmem:[%s2766_s15 + $0x1f8] sm:$0xff]  ;;  %v1213_v49 = vld [vmem:[%s3613_s5 + $0x38] sm:$0xff] }
  0x6f   : > { %801 = vmatpush1.bf16.msra.mxu0 %v2327_v14  ;;  %874 = vmatpush1.bf16.msra.mxu1 %v2329_v16  ;;  %v2318_v14 = vcombine.high %v365_v2, %v369_v3  ;;  %v376_v16 = vld [vmem:[%s2766_s15 + $0x1b0] sm:$0xff] }
  0x70   : > { %932 = vmatprep.subr.bf16.mxu0 %v2856_v18  ;;  %1005 = vmatprep.subr.bf16.mxu1 %v2863_v20  ;;  %v2324_v29 = vcombine.high %v372_v15, %v376_v16 }
  0x71   : > { %434 = vperm.xlu1 %2484, %v400_v58   ;;  %1231 = vperm.xlu0 %2483, %v1209_v61  }
  0x72   : > { %819 = vmatmul.mubr.bf16.vlgmr.msra.gmra.mrb[0].mxu0 %v2861_v19  ;;  %892 = vmatmul.mubr.bf16.vlgmr.msra.gmra.mrb[0].mxu1 %v2861_v19 }
  0x73   : > { %933 = vmatpush1.bf16.msra.mxu0 %v2872_v28  ;;  %1006 = vmatpush1.bf16.msra.mxu1 %v2878_v30 }
  0x74   : > { %934 = vmatprep.subr.bf16.mxu0 %v2880_v31  ;;  %1007 = vmatprep.subr.bf16.mxu1 %v2883_v32 }
  0x75   : > { %828 = vmatprep.mubr.bf16.mxu0 %v2627_v10  ;;  %901 = vmatprep.mubr.bf16.mxu1 %v2627_v10 }
  0x76   : > { %439 = vperm.xlu1 %2484, %v401_v6   ;;  %1236 = vperm.xlu0 %2483, %v1210_v26  }
  0x77   : > { %935 = vmatpush1.bf16.msra.mxu0 %v2892_v37  ;;  %1008 = vmatpush1.bf16.msra.mxu1 %v2899_v39 }
  0x78   : > { %936 = vmatprep.subr.bf16.mxu0 %v2292_v40  ;;  %1009 = vmatprep.subr.bf16.mxu1 %v2294_v42  ;;  %v381_v40 = vld [vmem:[%s2766_s15 + $0x1d8] sm:$0xff]  ;;  %v2323_v42 = vcombine.low %v372_v15, %v376_v16 }
  0x79   : > { %v2334_v47 = vcombine.high %v381_v40, %v385_v41 }
  0x7a   : > { %829 = vmatmul.mubr.bf16.gmra.mrb[4].mxu0 %v2912_v45  ;;  %902 = vmatmul.mubr.bf16.gmra.mrb[4].mxu1 %v2912_v45 }
  0x7b   : > { %937 = vmatpush1.bf16.msra.mxu0 %v2291_v48  ;;  %1010 = vmatpush1.bf16.msra.mxu1 %v2293_v50  ;;  %v2331_v48 = vcombine.low %v380_v35, %v384_v36  ;;  %v2333_v50 = vcombine.low %v381_v40, %v385_v41  ;;  %v1508_v40 = vstv %s3033_s16 }
  0x7c   : > { %938 = vmatprep.subr.bf16.mxu0 %v2300_v51  ;;  %1011 = vmatprep.subr.bf16.mxu1 %v2302_v52 }
  0x7d   : > { %838 = vmatprep.mubr.bf16.mxu0 %v2627_v10  ;;  %911 = vmatprep.mubr.bf16.mxu1 %v2627_v10 }
  0x7e   : > { %1241 = vperm.xlu1 %2484, %v1211_v33   ;;  %1246 = vperm.xlu0 %2483, %v1212_v43  }
  0x7f   : > { %939 = vmatpush1.bf16.msra.mxu0 %v2299_v57  ;;  %1012 = vmatpush1.bf16.msra.mxu1 %v2301_v59 }
  0x80   : > { %940 = vmatprep.subr.bf16.mxu0 %v2308_v60  ;;  %1013 = vmatprep.subr.bf16.mxu1 %v2310_v62  ;;  %v1498_v60 = vstv %s3006_s30 }
  0x82   : > { %839 = vmatmul.mubr.bf16.gmra.mrb[8].mxu0 %v2940_v1  ;;  %912 = vmatmul.mubr.bf16.gmra.mrb[8].mxu1 %v2940_v1 }
  0x83   : > { %941 = vmatpush1.bf16.msra.mxu0 %v2307_v4  ;;  %1014 = vmatpush1.bf16.msra.mxu1 %v2309_v8 }
  0x84   : > { %942 = vmatprep.subr.bf16.mxu0 %v2316_v9  ;;  %1015 = vmatprep.subr.bf16.mxu1 %v2318_v14  ;;  %v1503_v14 = vstv %s3022_s12 }
  0x85   : > { %848 = vmatprep.mubr.bf16.mxu0 %v2627_v10  ;;  %921 = vmatprep.mubr.bf16.mxu1 %v2627_v10 }
  0x86   : > { %1251 = vperm.xlu1 %2484, %v1213_v49  }
  0x87   : > { %943 = vmatpush1.bf16.msra.mxu0 %v2315_v25  ;;  %1016 = vmatpush1.bf16.msra.mxu1 %v2317_v27 }
  0x88   : > { %944 = vmatprep.subr.bf16.mxu0 %v2324_v29  ;;  %1017 = vmatprep.subr.bf16.mxu1 %v2326_v34 }
  0x8a   : > { %849 = vmatmul.mubr.bf16.gmra.mrb[12].mxu0 %v2488_v38  ;;  %922 = vmatmul.mubr.bf16.gmra.mrb[12].mxu1 %v2488_v38 }
  0x8b   : > { %945 = vmatpush1.bf16.msra.mxu0 %v2323_v42  ;;  %1018 = vmatpush1.bf16.msra.mxu1 %v2325_v44 }
  0x8c   : > { %946 = vmatprep.subr.bf16.mxu0 %v2332_v46  ;;  %1019 = vmatprep.subr.bf16.mxu1 %v2334_v47 }
  0x8d   : > { %964 = vmatprep.mubr.bf16.mxu0 %v2627_v10  ;;  %1037 = vmatprep.mubr.bf16.mxu1 %v2627_v10 }
  0x8f   : > { %947 = vmatpush1.bf16.msra.mxu0 %v2331_v48  ;;  %1020 = vmatpush1.bf16.msra.mxu1 %v2333_v50 }
  0x90   : > { %2372 = vmatprep.subr.bf16.mxu0 %v2783_v5  ;;  %2380 = vmatprep.subr.bf16.mxu1 %v2792_v11  ;;  %v1424_v5 = vlaneseq }
  0x92   : > { %965 = vmatmul.mubr.bf16.vlgmr.msra.gmra.mrb[16].mxu0 %v2861_v19  ;;  %1038 = vmatmul.mubr.bf16.vlgmr.msra.gmra.mrb[16].mxu1 %v2861_v19 }
  0x93   : > { %974 = vmatprep.mubr.bf16.mxu0 %v2627_v10  ;;  %1047 = vmatprep.mubr.bf16.mxu1 %v2627_v10 }
  0x98   : > { %2374 = vmatpush1.bf16.xpose.msra.mxu0 %v2786_v7  ;;  %2382 = vmatpush1.bf16.xpose.msra.mxu1 %v2794_v12  ;;  %v3002_v12 = vshrl.u32 %v1424_v5, 7 }
  0x99   : > { %2376 = vmatprep.subr.bf16.mxu0 %v2796_v13  ;;  %2384 = vmatprep.subr.bf16.mxu1 %v2803_v17 }
  0x9a   : > { %975 = vmatmul.mubr.bf16.gmra.mrb[20].mxu0 %v2912_v45  ;;  %1048 = vmatmul.mubr.bf16.gmra.mrb[20].mxu1 %v2912_v45  ;;  %v3011_v17 = vsub.s32 0, %v3002_v12  ;;  %vm1493_vm2 = vcmp.eq.s32.totalorder %v3002_v12, 0  ;;  %v1442_v61 = vsub.s32 4, %v3002_v12  ;;  %v1446_v62 = vsub.s32 5, %v3002_v12 }
  0x9b   : > { %984 = vmatprep.mubr.bf16.mxu0 %v2627_v10  ;;  %1057 = vmatprep.mubr.bf16.mxu1 %v2627_v10  ;;  %v1450_v63 = vsub.s32 6, %v3002_v12  ;;  %vm1500_vm3 = vcmp.eq.s32.totalorder %v3002_v12, 1  ;;  %v1496_v4 = vsel %vm1493_vm2, %v1495_v56, 0  ;;  %v1499_v9 = vsel %vm1493_vm2, %v1498_v60, 0 }
  0x9c   : > { %3641 = vst [vmem:[#allocation20_spill] sm:$0xff] %v3011_v17  ;;  %v1501_v29 = vsel %vm1500_vm3, %v1498_v60, %v1496_v4  ;;  %vm1505_vm4 = vcmp.eq.s32.totalorder %v3002_v12, 2 }
  0xa0   : > { %2378 = vmatpush1.bf16.xpose.msra.mxu0 %v2811_v21  ;;  %2386 = vmatpush1.bf16.xpose.msra.mxu1 %v2815_v22  ;;  %v1474_v21 = vand.u32 127, %v1424_v5  ;;  %v3019_v22 = vld [vmem:[%s310_s26] sm:$0xff] }
  0xa1   : > { %2388 = vmatprep.subr.bf16.mxu0 %v2856_v18  ;;  %2396 = vmatprep.subr.bf16.mxu1 %v2863_v20  ;;  %3642 = vst [vmem:[#allocation21_spill] sm:$0xff] %v3019_v22  ;;  %v1430_v18 = vsub.s32 1, %v3002_v12  ;;  %v1438_v20 = vsub.s32 3, %v3002_v12  ;;  %v3069_v26 = vrot.slane %v3019_v22, %v1442_v61  ;;  %v3072_v27 = vrot.slane %v3019_v22, %v1446_v62 }
  0xa2   : > { %985 = vmatmul.mubr.bf16.gmra.mrb[24].mxu0 %v2940_v1  ;;  %1058 = vmatmul.mubr.bf16.gmra.mrb[24].mxu1 %v2940_v1  ;;  %v1476_v52 = vadd.s32 256, %v1474_v21  ;;  %v1475_v58 = vadd.s32 128, %v1474_v21  ;;  %v1477_v59 = vadd.s32 384, %v1474_v21  ;;  %v1454_v1 = vsub.s32 7, %v3002_v12 }
  0xa3   : > { %994 = vmatprep.mubr.bf16.mxu0 %v2627_v10  ;;  %1067 = vmatprep.mubr.bf16.mxu1 %v2627_v10  ;;  %v1434_v10 = vsub.s32 2, %v3002_v12  ;;  %v3038_v54 = vrot.slane %v3019_v22, %v1430_v18  ;;  %v3043_v57 = vrot.slane %v3019_v22, %v1438_v20  ;;  %v1478_v2 = vadd.s32 512, %v1474_v21  ;;  %3649 = vst [vmem:[#allocation28_spill] sm:$0xff] %v3069_v26 }
  0xa4   : > { %v3053_v3 = vadd.s32 %v1482_v55, %v1474_v21  ;;  %v1479_v6 = vadd.s32 640, %v1474_v21  ;;  %v1480_v8 = vadd.s32 768, %v1474_v21  ;;  %v1481_v15 = vadd.s32 896, %v1474_v21  ;;  %3650 = vst [vmem:[#allocation29_spill] sm:$0xff] %v3072_v27 }
  0xa5   : > { %v3031_v51 = vrot.slane %v3019_v22, %v1434_v10  ;;  %3644 = vst [vmem:[#allocation23_spill] sm:$0xff] %v3038_v54  ;;  %3645 = vst [vmem:[#allocation24_spill] sm:$0xff] %v3043_v57  ;;  %v3060_v16 = vadd.s32 %v1482_v55, %v1475_v58  ;;  %v3062_v23 = vadd.s32 %v1482_v55, %v1476_v52 }
  0xa6   : > { %v3064_v24 = vadd.s32 %v1482_v55, %v1477_v59  ;;  %v3080_v35 = vrot.slane %v3019_v22, %v1450_v63  ;;  %v3083_v36 = vrot.slane %v3019_v22, %v1454_v1  ;;  %v3089_v44 = vadd.s32 %v1482_v55, %v1478_v2 }
  0xa7   : > { %3643 = vst [vmem:[#allocation22_spill] sm:$0xff] %v3031_v51  ;;  %3646 = vst [vmem:[#allocation25_spill] sm:$0xff] %v3060_v16  ;;  %v3091_v46 = vadd.s32 %v1482_v55, %v1479_v6  ;;  %v3093_v47 = vadd.s32 %v1482_v55, %v1480_v8  ;;  %v3097_v10 = vadd.s32 %v1482_v55, %v1481_v15 }
  0xa8   : > { %3647 = vst [vmem:[#allocation26_spill] sm:$0xff] %v3062_v23  ;;  %3648 = vst [vmem:[#allocation27_spill] sm:$0xff] %v3064_v24  ;;  %v3101_v21 = vsel %vm1505_vm4, %v1503_v14, %v1501_v29 }
  0xa9   : > { %3651 = vst [vmem:[#allocation30_spill] sm:$0xff] %v3080_v35  ;;  %3652 = vst [vmem:[#allocation31_spill] sm:$0xff] %v3083_v36  ;;  %vm1510_vm5 = vcmp.ge.s32.totalorder %v3053_v3, %v3101_v21 }
  0xaa   : > { %995 = vmatmul.mubr.bf16.gmra.mrb[28].mxu0 %v2488_v38  ;;  %1068 = vmatmul.mubr.bf16.gmra.mrb[28].mxu1 %v2488_v38  ;;  %v1504_v38 = vsel %vm1500_vm3, %v1503_v14, %v1499_v9  ;;  %3653 = vst [vmem:[#allocation32_spill] sm:$0xff] %v3089_v44  ;;  %3654 = vst [vmem:[#allocation33_spill] sm:$0xff] %v3091_v46 }
  0xab   : > { %3655 = vst [vmem:[#allocation34_spill] sm:$0xff] %v3093_v47  ;;  %3656 = vst [vmem:[#allocation35_spill] sm:$0xff] %v3097_v10  ;;  %v3107_v59 = vsel %vm1505_vm4, %v1508_v40, %v1504_v38 }
  0xac   : > { %vm1518_vm6 = vcmp.lt.s32.totalorder %v3053_v3, %v3107_v59 }
  0xad   : > { %vm3322_vm3 = vmand %vm1510_vm5, %vm1518_vm6 }
  0xd0   : > { %v2998_v7 = vpop.permute.xlu0 %404 }
  0xe0   : > { %v3000_v11 = vpop.permute.xlu1 %414  ;;  %v3008_v13 = vpop.permute.xlu0 %409 }
  0xe4   : > { %v3024_v19 = vpop.permute.xlu1 %419  ;;  %v3035_v53 = vpop.permute.xlu0 %424 }
  0xe8   : > { %v3050_v0 = vpop.permute.xlu1 %1216  ;;  %v3066_v25 = vpop.permute.xlu0 %1221 }
  0xec   : > { %v3077_v34 = vpop.permute.xlu1 %429  ;;  %v3113_v40 = vpop.permute.xlu0 %1226 }
 0x145   : > { %v820_v33 = vpop.f32.mrb[0].mxu0  ;;  %v893_v42 = vpop.f32.mrb[0].mxu1 }
 0x146   : > { %v821_v41 = vadd.f32 %v820_v33, %v2998_v7  ;;  %v822_v43 = vpop.f32.mrb[1].mxu0  ;;  %v894_v48 = vadd.f32 %v893_v42, %v2998_v7  ;;  %v895_v50 = vpop.f32.mrb[1].mxu1 }
 0x147   : > { %v823_v49 = vadd.f32 %v822_v43, %v2998_v7  ;;  %v824_v5 = vpop.f32.mrb[2].mxu0  ;;  %v896_v20 = vadd.f32 %v895_v50, %v2998_v7  ;;  %v897_v56 = vpop.f32.mrb[2].mxu1 }
 0x148   : > { %v1078_v18 = vmul.f32 0.01, %v821_v41  ;;  %v825_v52 = vadd.f32 %v824_v5, %v3008_v13  ;;  %v826_v58 = vpop.f32.mrb[3].mxu0  ;;  %v1080_v60 = vmul.f32 0.01, %v894_v48  ;;  %v898_v55 = vadd.f32 %v897_v56, %v3008_v13  ;;  %v899_v63 = vpop.f32.mrb[3].mxu1 }
 0x149   : > { %v1079_v61 = vmul.f32 0.01, %v823_v49  ;;  %v827_v62 = vadd.f32 %v826_v58, %v3008_v13  ;;  %v1081_v2 = vmul.f32 0.01, %v896_v20  ;;  %v900_v6 = vadd.f32 %v899_v63, %v3008_v13 }
 0x14a   : > { %v1142_v1 = vmax.f32 %v821_v41, %v1078_v18  ;;  %v1086_v4 = vmul.f32 0.01, %v825_v52  ;;  %v1144_v8 = vmax.f32 %v894_v48, %v1080_v60  ;;  %v1088_v14 = vmul.f32 0.01, %v898_v55  ;;  %v3117_v18 = vpop.permute.xlu1 %434 }
 0x14b   : > { %v1143_v9 = vmax.f32 %v823_v49, %v1079_v61  ;;  %v1087_v15 = vmul.f32 0.01, %v827_v62  ;;  %v1145_v29 = vmax.f32 %v896_v20, %v1081_v2  ;;  %v1089_v33 = vmul.f32 0.01, %v900_v6 }
 0x14c   : > { %v1150_v12 = vmax.f32 %v825_v52, %v1086_v4  ;;  %v1254_v38 = vmul.f32 %v3050_v0, %v1142_v1  ;;  %v1152_v42 = vmax.f32 %v898_v55, %v1088_v14  ;;  %v1256_v41 = vmul.f32 %v3050_v0, %v1144_v8 }
 0x14d   : > { %v1151_v43 = vmax.f32 %v827_v62, %v1087_v15  ;;  %v1255_v50 = vmul.f32 %v3050_v0, %v1143_v9  ;;  %v830_v5 = vpop.f32.mrb[4].mxu0  ;;  %v1153_v48 = vmax.f32 %v900_v6, %v1089_v33  ;;  %v1257_v49 = vmul.f32 %v3050_v0, %v1145_v29  ;;  %v903_v56 = vpop.f32.mrb[4].mxu1 }
 0x14e   : > { %v1262_v20 = vmul.f32 %v3066_v25, %v1150_v12  ;;  %v831_v52 = vadd.f32 %v830_v5, %v3000_v11  ;;  %v832_v58 = vpop.f32.mrb[5].mxu0  ;;  %v1264_v61 = vmul.f32 %v3066_v25, %v1152_v42  ;;  %v904_v55 = vadd.f32 %v903_v56, %v3000_v11  ;;  %v905_v63 = vpop.f32.mrb[5].mxu1 }
 0x14f   : > { %v1263_v60 = vmul.f32 %v3066_v25, %v1151_v43  ;;  %v833_v62 = vadd.f32 %v832_v58, %v3000_v11  ;;  %v834_v1 = vpop.f32.mrb[6].mxu0  ;;  %v1265_v2 = vmul.f32 %v3066_v25, %v1153_v48  ;;  %v906_v8 = vadd.f32 %v905_v63, %v3000_v11  ;;  %v907_v9 = vpop.f32.mrb[6].mxu1 }
 0x150   : > { %v1318_v4 = vadd.f32 %v1262_v20, %v1254_v38  ;;  %v1094_v6 = vmul.f32 0.01, %v831_v52  ;;  %v836_v14 = vpop.f32.mrb[7].mxu0  ;;  %v1344_v29 = vadd.f32 %v1264_v61, %v1256_v41  ;;  %v1096_v12 = vmul.f32 0.01, %v904_v55  ;;  %v909_v43 = vpop.f32.mrb[7].mxu1 }
 0x151   : > { %v1331_v15 = vadd.f32 %v1263_v60, %v1255_v50  ;;  %v1095_v33 = vmul.f32 0.01, %v833_v62  ;;  %v1357_v42 = vadd.f32 %v1265_v2, %v1257_v49  ;;  %v1097_v56 = vmul.f32 0.01, %v906_v8  ;;  %v3133_v41 = vpop.permute.xlu0 %1231 }
 0x152   : > { %v1158_v5 = vmax.f32 %v831_v52, %v1094_v6  ;;  %v835_v58 = vadd.f32 %v834_v1, %v3024_v19  ;;  %v1160_v45 = vmax.f32 %v904_v55, %v1096_v12  ;;  %v908_v48 = vadd.f32 %v907_v9, %v3024_v19 }
 0x153   : > { %v1159_v39 = vmax.f32 %v833_v62, %v1095_v33  ;;  %v837_v38 = vadd.f32 %v836_v14, %v3024_v19  ;;  %v1161_v20 = vmax.f32 %v906_v8, %v1097_v56  ;;  %v910_v37 = vadd.f32 %v909_v43, %v3024_v19  ;;  %v3137_v62 = vpop.permute.xlu1 %439 }
 0x154   : > { %v1102_v63 = vmul.f32 0.01, %v835_v58  ;;  %v1270_v50 = vmul.f32 %v3113_v40, %v1158_v5  ;;  %v1104_v60 = vmul.f32 0.01, %v908_v48  ;;  %v1272_v61 = vmul.f32 %v3113_v40, %v1160_v45 }
 0x155   : > { %v1103_v49 = vmul.f32 0.01, %v837_v38  ;;  %v1271_v52 = vmul.f32 %v3113_v40, %v1159_v39  ;;  %v840_v55 = vpop.f32.mrb[8].mxu0  ;;  %v1105_v2 = vmul.f32 0.01, %v910_v37  ;;  %v1273_v6 = vmul.f32 %v3113_v40, %v1161_v20  ;;  %v913_v9 = vpop.f32.mrb[8].mxu1 }
 0x156   : > { %v1166_v1 = vmax.f32 %v835_v58, %v1102_v63  ;;  %v1319_v8 = vadd.f32 %v1318_v4, %v1270_v50  ;;  %v842_v14 = vpop.f32.mrb[9].mxu0  ;;  %v1168_v12 = vmax.f32 %v908_v48, %v1104_v60  ;;  %v1345_v5 = vadd.f32 %v1344_v29, %v1272_v61  ;;  %v915_v56 = vpop.f32.mrb[9].mxu1 }
 0x157   : > { %v1167_v33 = vmax.f32 %v837_v38, %v1103_v49  ;;  %v1332_v43 = vadd.f32 %v1331_v15, %v1271_v52  ;;  %v844_v32 = vpop.f32.mrb[10].mxu0  ;;  %v1169_v31 = vmax.f32 %v910_v37, %v1105_v2  ;;  %v1358_v39 = vadd.f32 %v1357_v42, %v1273_v6  ;;  %v917_v28 = vpop.f32.mrb[10].mxu1 }
 0x158   : > { %v1278_v45 = vmul.f32 %v3133_v41, %v1166_v1  ;;  %v841_v30 = vadd.f32 %v840_v55, %v3035_v53  ;;  %v846_v58 = vpop.f32.mrb[11].mxu0  ;;  %v1280_v4 = vmul.f32 %v3133_v41, %v1168_v12  ;;  %v914_v20 = vadd.f32 %v913_v9, %v3035_v53  ;;  %v919_v15 = vpop.f32.mrb[11].mxu1 }
 0x159   : > { %v1279_v63 = vmul.f32 %v3133_v41, %v1167_v33  ;;  %v843_v48 = vadd.f32 %v842_v14, %v3035_v53  ;;  %v1281_v29 = vmul.f32 %v3133_v41, %v1169_v31  ;;  %v916_v42 = vadd.f32 %v915_v56, %v3035_v53  ;;  %v3148_v61 = vpop.permute.xlu0 %1236 }
 0x15a   : > { %v1320_v38 = vadd.f32 %v1319_v8, %v1278_v45  ;;  %v1110_v37 = vmul.f32 0.01, %v841_v30  ;;  %v1346_v60 = vadd.f32 %v1345_v5, %v1280_v4  ;;  %v1112_v49 = vmul.f32 0.01, %v914_v20  ;;  %v3153_v8 = vpop.permute.xlu1 %1241 }
 0x15b   : > { %v1333_v50 = vadd.f32 %v1332_v43, %v1279_v63  ;;  %v1111_v52 = vmul.f32 0.01, %v843_v48  ;;  %v1359_v55 = vadd.f32 %v1358_v39, %v1281_v29  ;;  %v1113_v2 = vmul.f32 0.01, %v916_v42 }
 0x15c   : > { %v1174_v1 = vmax.f32 %v841_v30, %v1110_v37  ;;  %v845_v6 = vadd.f32 %v844_v32, %v3077_v34  ;;  %v1176_v9 = vmax.f32 %v914_v20, %v1112_v49  ;;  %v918_v12 = vadd.f32 %v917_v28, %v3077_v34 }
 0x15d   : > { %v1175_v14 = vmax.f32 %v843_v48, %v1111_v52  ;;  %v847_v31 = vadd.f32 %v846_v58, %v3077_v34  ;;  %v850_v33 = vpop.f32.mrb[12].mxu0  ;;  %v1177_v43 = vmax.f32 %v916_v42, %v1113_v2  ;;  %v920_v56 = vadd.f32 %v919_v15, %v3077_v34  ;;  %v923_v39 = vpop.f32.mrb[12].mxu1 }
 0x15e   : > { %v1118_v5 = vmul.f32 0.01, %v845_v6  ;;  %v1286_v45 = vmul.f32 %v3148_v61, %v1174_v1  ;;  %v852_v30 = vpop.f32.mrb[13].mxu0  ;;  %v1120_v63 = vmul.f32 0.01, %v918_v12  ;;  %v1288_v20 = vmul.f32 %v3148_v61, %v1176_v9  ;;  %v925_v28 = vpop.f32.mrb[13].mxu1 }
 0x15f   : > { %v1119_v4 = vmul.f32 0.01, %v847_v31  ;;  %v1287_v32 = vmul.f32 %v3148_v61, %v1175_v14  ;;  %v854_v48 = vpop.f32.mrb[14].mxu0  ;;  %v1121_v29 = vmul.f32 0.01, %v920_v56  ;;  %v1289_v37 = vmul.f32 %v3148_v61, %v1177_v43  ;;  %v927_v49 = vpop.f32.mrb[14].mxu1 }
 0x160   : > { %v1182_v58 = vmax.f32 %v845_v6, %v1118_v5  ;;  %v1321_v42 = vadd.f32 %v1320_v38, %v1286_v45  ;;  %v856_v52 = vpop.f32.mrb[15].mxu0  ;;  %v1184_v15 = vmax.f32 %v918_v12, %v1120_v63  ;;  %v1347_v36 = vadd.f32 %v1346_v60, %v1288_v20  ;;  %v929_v35 = vpop.f32.mrb[15].mxu1 }
 0x161   : > { %v1183_v2 = vmax.f32 %v847_v31, %v1119_v4  ;;  %v1334_v1 = vadd.f32 %v1333_v50, %v1287_v32  ;;  %v1185_v27 = vmax.f32 %v920_v56, %v1121_v29  ;;  %v1360_v26 = vadd.f32 %v1359_v55, %v1289_v37  ;;  %v3174_v45 = vpop.permute.xlu0 %1246 }
 0x162   : > { %v1294_v14 = vmul.f32 %v3153_v8, %v1182_v58  ;;  %v851_v9 = vadd.f32 %v850_v33, %v3117_v18  ;;  %v1296_v6 = vmul.f32 %v3153_v8, %v1184_v15  ;;  %v924_v43 = vadd.f32 %v923_v39, %v3117_v18 }
 0x163   : > { %v1295_v57 = vmul.f32 %v3153_v8, %v1183_v2  ;;  %v853_v38 = vadd.f32 %v852_v30, %v3117_v18  ;;  %v1297_v12 = vmul.f32 %v3153_v8, %v1185_v27  ;;  %v926_v60 = vadd.f32 %v925_v28, %v3117_v18 }
 0x164   : > { %v3167_v31 = vadd.f32 %v1321_v42, %v1294_v14  ;;  %v1126_v50 = vmul.f32 0.01, %v851_v9  ;;  %v3172_v5 = vadd.f32 %v1347_v36, %v1296_v6  ;;  %v1128_v33 = vmul.f32 0.01, %v924_v43 }
 0x165   : > { %v3170_v55 = vadd.f32 %v1334_v1, %v1295_v57  ;;  %v1127_v56 = vmul.f32 0.01, %v853_v38  ;;  %v966_v63 = vpop.f32.mrb[16].mxu0  ;;  %v3176_v4 = vadd.f32 %v1360_v26, %v1297_v12  ;;  %v1129_v30 = vmul.f32 0.01, %v926_v60  ;;  %v1039_v32 = vpop.f32.mrb[16].mxu1 }
 0x166   : > { %v1190_v39 = vmax.f32 %v851_v9, %v1126_v50  ;;  %v855_v27 = vadd.f32 %v854_v48, %v3137_v62  ;;  %v968_v20 = vpop.f32.mrb[17].mxu0  ;;  %v1192_v58 = vmax.f32 %v924_v43, %v1128_v33  ;;  %v928_v57 = vadd.f32 %v927_v49, %v3137_v62  ;;  %v1041_v28 = vpop.f32.mrb[17].mxu1 }
 0x167   : > { %v1191_v29 = vmax.f32 %v853_v38, %v1127_v56  ;;  %v857_v36 = vadd.f32 %v856_v52, %v3137_v62  ;;  %v970_v37 = vpop.f32.mrb[18].mxu0  ;;  %v1193_v42 = vmax.f32 %v926_v60, %v1129_v30  ;;  %v930_v2 = vadd.f32 %v929_v35, %v3137_v62  ;;  %v1043_v1 = vpop.f32.mrb[18].mxu1 }
 0x168   : > { %v1134_v15 = vmul.f32 0.01, %v855_v27  ;;  %v3183_v26 = vmul.f32 %v3174_v45, %v1190_v39  ;;  %v972_v14 = vpop.f32.mrb[19].mxu0  ;;  %v1136_v48 = vmul.f32 0.01, %v928_v57  ;;  %v3189_v49 = vmul.f32 %v3174_v45, %v1192_v58  ;;  %v3191_v52 = vpop.permute.xlu1 %1251 }
 0x169   : > { %v1135_v9 = vmul.f32 0.01, %v857_v36  ;;  %v3186_v6 = vmul.f32 %v3174_v45, %v1191_v29  ;;  %v1045_v43 = vpop.f32.mrb[19].mxu1  ;;  %v1137_v12 = vmul.f32 0.01, %v930_v2  ;;  %v3194_v35 = vmul.f32 %v3174_v45, %v1193_v42 }
 0x16a   : > { %v1198_v38 = vmax.f32 %v855_v27, %v1134_v15  ;;  %v967_v50 = vadd.f32 %v966_v63, %v2998_v7  ;;  %v1200_v60 = vmax.f32 %v928_v57, %v1136_v48  ;;  %v1040_v56 = vadd.f32 %v1039_v32, %v2998_v7 }
 0x16b   : > { %v1199_v33 = vmax.f32 %v857_v36, %v1135_v9  ;;  %v969_v39 = vadd.f32 %v968_v20, %v2998_v7  ;;  %v1201_v30 = vmax.f32 %v930_v2, %v1137_v12  ;;  %v1042_v51 = vadd.f32 %v1041_v28, %v2998_v7 }
 0x16c   : > { %v3200_v58 = vmul.f32 %v3191_v52, %v1198_v38  ;;  %v1082_v29 = vmul.f32 0.01, %v967_v50  ;;  %v3207_v42 = vmul.f32 %v3191_v52, %v1200_v60  ;;  %v1084_v63 = vmul.f32 0.01, %v1040_v56 }
 0x16d   : > { %v3204_v27 = vmul.f32 %v3191_v52, %v1199_v33  ;;  %v1083_v57 = vmul.f32 0.01, %v969_v39  ;;  %v976_v36 = vpop.f32.mrb[20].mxu0  ;;  %v3210_v32 = vmul.f32 %v3191_v52, %v1201_v30  ;;  %v1085_v15 = vmul.f32 0.01, %v1042_v51  ;;  %v1049_v48 = vpop.f32.mrb[20].mxu1 }
 0x16e   : > { %v1146_v20 = vmax.f32 %v967_v50, %v1082_v29  ;;  %v971_v2 = vadd.f32 %v970_v37, %v3008_v13  ;;  %v978_v9 = vpop.f32.mrb[21].mxu0  ;;  %v1148_v38 = vmax.f32 %v1040_v56, %v1084_v63  ;;  %v1044_v28 = vadd.f32 %v1043_v1, %v3008_v13  ;;  %v1051_v60 = vpop.f32.mrb[21].mxu1 }
 0x16f   : > { %v1147_v7 = vmax.f32 %v969_v39, %v1083_v57  ;;  %v973_v12 = vadd.f32 %v972_v14, %v3008_v13  ;;  %v980_v33 = vpop.f32.mrb[22].mxu0  ;;  %v1149_v17 = vmax.f32 %v1042_v51, %v1085_v15  ;;  %v1046_v30 = vadd.f32 %v1045_v43, %v3008_v13  ;;  %v1053_v50 = vpop.f32.mrb[22].mxu1 }
 0x170   : > { %v1258_v54 = vmul.f32 %v3050_v0, %v1146_v20  ;;  %v1090_v22 = vmul.f32 0.01, %v971_v2  ;;  %v982_v29 = vpop.f32.mrb[23].mxu0  ;;  %v1260_v37 = vmul.f32 %v3050_v0, %v1148_v38  ;;  %v1092_v56 = vmul.f32 0.01, %v1044_v28  ;;  %v1055_v63 = vpop.f32.mrb[23].mxu1 }
 0x171   : > { %v1259_v10 = vmul.f32 %v3050_v0, %v1147_v7  ;;  %v1091_v39 = vmul.f32 0.01, %v973_v12  ;;  %v1261_v1 = vmul.f32 %v3050_v0, %v1149_v17  ;;  %v1093_v57 = vmul.f32 0.01, %v1046_v30 }
 0x172   : > { %v1154_v14 = vmax.f32 %v971_v2, %v1090_v22  ;;  %v977_v47 = vadd.f32 %v976_v36, %v3000_v11  ;;  %v1156_v20 = vmax.f32 %v1044_v28, %v1092_v56  ;;  %v1050_v15 = vadd.f32 %v1049_v48, %v3000_v11 }
 0x173   : > { %v1155_v51 = vmax.f32 %v973_v12, %v1091_v39  ;;  %v979_v13 = vadd.f32 %v978_v9, %v3000_v11  ;;  %v1157_v38 = vmax.f32 %v1046_v30, %v1093_v57  ;;  %v1052_v7 = vadd.f32 %v1051_v60, %v3000_v11 }
 0x174   : > { %v1266_v43 = vmul.f32 %v3066_v25, %v1154_v14  ;;  %v1098_v46 = vmul.f32 0.01, %v977_v47  ;;  %v1268_v44 = vmul.f32 %v3066_v25, %v1156_v20  ;;  %v1100_v22 = vmul.f32 0.01, %v1050_v15 }
 0x175   : > { %v1267_v17 = vmul.f32 %v3066_v25, %v1155_v51  ;;  %v1099_v0 = vmul.f32 0.01, %v979_v13  ;;  %v986_v2 = vpop.f32.mrb[24].mxu0  ;;  %v1269_v28 = vmul.f32 %v3066_v25, %v1157_v38  ;;  %v1101_v48 = vmul.f32 0.01, %v1052_v7  ;;  %v1059_v56 = vpop.f32.mrb[24].mxu1 }
 0x176   : > { %v1370_v36 = vadd.f32 %v1266_v43, %v1258_v54  ;;  %v1162_v12 = vmax.f32 %v977_v47, %v1098_v46  ;;  %v988_v9 = vpop.f32.mrb[25].mxu0  ;;  %v1396_v39 = vadd.f32 %v1268_v44, %v1260_v37  ;;  %v1164_v30 = vmax.f32 %v1050_v15, %v1100_v22  ;;  %v1061_v24 = vpop.f32.mrb[25].mxu1 }
 0x177   : > { %v1383_v14 = vadd.f32 %v1267_v17, %v1259_v10  ;;  %v1163_v57 = vmax.f32 %v979_v13, %v1099_v0  ;;  %v990_v11 = vpop.f32.mrb[26].mxu0  ;;  %v1409_v60 = vadd.f32 %v1269_v28, %v1261_v1  ;;  %v1165_v51 = vmax.f32 %v1052_v7, %v1101_v48  ;;  %v1063_v16 = vpop.f32.mrb[26].mxu1 }
 0x178   : > { %v1274_v20 = vmul.f32 %v3113_v40, %v1162_v12  ;;  %v981_v23 = vadd.f32 %v980_v33, %v3024_v19  ;;  %v992_v54 = vpop.f32.mrb[27].mxu0  ;;  %v1276_v25 = vmul.f32 %v3113_v40, %v1164_v30  ;;  %v1054_v47 = vadd.f32 %v1053_v50, %v3024_v19  ;;  %v1065_v10 = vpop.f32.mrb[27].mxu1 }
 0x179   : > { %v1275_v46 = vmul.f32 %v3113_v40, %v1163_v57  ;;  %v983_v44 = vadd.f32 %v982_v29, %v3024_v19  ;;  %v1277_v15 = vmul.f32 %v3113_v40, %v1165_v51  ;;  %v1056_v13 = vadd.f32 %v1055_v63, %v3024_v19 }
 0x17a   : > { %v1371_v37 = vadd.f32 %v1370_v36, %v1274_v20  ;;  %v1106_v1 = vmul.f32 0.01, %v981_v23  ;;  %v1397_v43 = vadd.f32 %v1396_v39, %v1276_v25  ;;  %v1108_v33 = vmul.f32 0.01, %v1054_v47 }
 0x17b   : > { %v1384_v38 = vadd.f32 %v1383_v14, %v1275_v46  ;;  %v1107_v7 = vmul.f32 0.01, %v983_v44  ;;  %v1410_v17 = vadd.f32 %v1409_v60, %v1277_v15  ;;  %v1109_v0 = vmul.f32 0.01, %v1056_v13 }
 0x17c   : > { %v1170_v22 = vmax.f32 %v981_v23, %v1106_v1  ;;  %v987_v28 = vadd.f32 %v986_v2, %v3035_v53  ;;  %v1172_v12 = vmax.f32 %v1054_v47, %v1108_v33  ;;  %v1060_v29 = vadd.f32 %v1059_v56, %v3035_v53 }
 0x17d   : > { %v1171_v50 = vmax.f32 %v983_v44, %v1107_v7  ;;  %v989_v36 = vadd.f32 %v988_v9, %v3035_v53  ;;  %v996_v48 = vpop.f32.mrb[28].mxu0  ;;  %v1173_v30 = vmax.f32 %v1056_v13, %v1109_v0  ;;  %v1062_v63 = vadd.f32 %v1061_v24, %v3035_v53  ;;  %v1069_v39 = vpop.f32.mrb[28].mxu1 }
 0x17e   : > { %v1282_v40 = vmul.f32 %v3133_v41, %v1170_v22  ;;  %v1114_v19 = vmul.f32 0.01, %v987_v28  ;;  %v998_v14 = vpop.f32.mrb[29].mxu0  ;;  %v1284_v23 = vmul.f32 %v3133_v41, %v1172_v12  ;;  %v1116_v2 = vmul.f32 0.01, %v1060_v29  ;;  %v1071_v20 = vpop.f32.mrb[29].mxu1 }
 0x17f   : > { %v1283_v57 = vmul.f32 %v3133_v41, %v1171_v50  ;;  %v1115_v60 = vmul.f32 0.01, %v989_v36  ;;  %v1000_v51 = vpop.f32.mrb[30].mxu0  ;;  %v1285_v9 = vmul.f32 %v3133_v41, %v1173_v30  ;;  %v1117_v46 = vmul.f32 0.01, %v1062_v63  ;;  %v1073_v47 = vpop.f32.mrb[30].mxu1 }
 0x180   : > { %v1372_v56 = vadd.f32 %v1371_v37, %v1282_v40  ;;  %v1178_v25 = vmax.f32 %v987_v28, %v1114_v19  ;;  %v1002_v44 = vpop.f32.mrb[31].mxu0  ;;  %v1398_v15 = vadd.f32 %v1397_v43, %v1284_v23  ;;  %v1180_v53 = vmax.f32 %v1060_v29, %v1116_v2  ;;  %v1075_v13 = vpop.f32.mrb[31].mxu1 }
 0x181   : > { %v1385_v1 = vadd.f32 %v1384_v38, %v1283_v57  ;;  %v1179_v24 = vmax.f32 %v989_v36, %v1115_v60  ;;  %v1411_v33 = vadd.f32 %v1410_v17, %v1285_v9  ;;  %v1181_v22 = vmax.f32 %v1062_v63, %v1117_v46 }
 0x182   : > { %v1290_v7 = vmul.f32 %v3148_v61, %v1178_v25  ;;  %v991_v0 = vadd.f32 %v990_v11, %v3077_v34  ;;  %v1292_v12 = vmul.f32 %v3148_v61, %v1180_v53  ;;  %v1064_v41 = vadd.f32 %v1063_v16, %v3077_v34 }
 0x183   : > { %v1291_v37 = vmul.f32 %v3148_v61, %v1179_v24  ;;  %v993_v28 = vadd.f32 %v992_v54, %v3077_v34  ;;  %v1293_v43 = vmul.f32 %v3148_v61, %v1181_v22  ;;  %v1066_v29 = vadd.f32 %v1065_v10, %v3077_v34 }
 0x184   : > { %v1373_v50 = vadd.f32 %v1372_v56, %v1290_v7  ;;  %v1122_v38 = vmul.f32 0.01, %v991_v0  ;;  %v1399_v17 = vadd.f32 %v1398_v15, %v1292_v12  ;;  %v1124_v40 = vmul.f32 0.01, %v1064_v41 }
 0x185   : > { %v1386_v36 = vadd.f32 %v1385_v1, %v1291_v37  ;;  %v1123_v30 = vmul.f32 0.01, %v993_v28  ;;  %v1412_v19 = vadd.f32 %v1411_v33, %v1293_v43  ;;  %v1125_v63 = vmul.f32 0.01, %v1066_v29 }
 0x186   : > { %v1186_v11 = vmax.f32 %v991_v0, %v1122_v38  ;;  %v997_v23 = vadd.f32 %v996_v48, %v3117_v18  ;;  %v1188_v57 = vmax.f32 %v1064_v41, %v1124_v40  ;;  %v1070_v16 = vadd.f32 %v1069_v39, %v3117_v18 }
 0x187   : > { %v1187_v2 = vmax.f32 %v993_v28, %v1123_v30  ;;  %v999_v54 = vadd.f32 %v998_v14, %v3117_v18  ;;  %v1189_v60 = vmax.f32 %v1066_v29, %v1125_v63  ;;  %v1072_v34 = vadd.f32 %v1071_v20, %v3117_v18 }
 0x188   : > { %v1298_v61 = vmul.f32 %v3153_v8, %v1186_v11  ;;  %v1130_v56 = vmul.f32 0.01, %v997_v23  ;;  %v1300_v10 = vmul.f32 %v3153_v8, %v1188_v57  ;;  %v1132_v25 = vmul.f32 0.01, %v1070_v16 }
 0x189   : > { %v1299_v9 = vmul.f32 %v3153_v8, %v1187_v2  ;;  %v1131_v46 = vmul.f32 0.01, %v999_v54  ;;  %v1301_v48 = vmul.f32 %v3153_v8, %v1189_v60  ;;  %v1133_v53 = vmul.f32 0.01, %v1072_v34  ;;  %v3659_v60 = vld [vmem:[#allocation27_spill] sm:$0xff] }
 0x18a   : > { %v1374_v15 = vadd.f32 %v1373_v50, %v1298_v61  ;;  %v1194_v1 = vmax.f32 %v997_v23, %v1130_v56  ;;  %v1400_v39 = vadd.f32 %v1399_v17, %v1300_v10  ;;  %v1196_v14 = vmax.f32 %v1070_v16, %v1132_v25  ;;  %v3658_v16 = vld [vmem:[#allocation26_spill] sm:$0xff]  ;;  %v3660_v25 = vld [vmem:[#allocation32_spill] sm:$0xff] }
 0x18b   : > { %v1387_v24 = vadd.f32 %v1386_v36, %v1299_v9  ;;  %v1195_v33 = vmax.f32 %v999_v54, %v1131_v46  ;;  %v1413_v7 = vadd.f32 %v1412_v19, %v1301_v48  ;;  %v1197_v0 = vmax.f32 %v1072_v34, %v1133_v53  ;;  %v3661_v53 = vld [vmem:[#allocation33_spill] sm:$0xff] }
 0x18c   : > { %v1306_v22 = vmul.f32 %v3174_v45, %v1194_v1  ;;  %v1001_v18 = vadd.f32 %v1000_v51, %v3137_v62  ;;  %v1308_v20 = vmul.f32 %v3174_v45, %v1196_v14  ;;  %v1074_v37 = vadd.f32 %v1073_v47, %v3137_v62 }
 0x18d   : > { %v1307_v12 = vmul.f32 %v3174_v45, %v1195_v33  ;;  %v1003_v8 = vadd.f32 %v1002_v44, %v3137_v62  ;;  %v1309_v28 = vmul.f32 %v3174_v45, %v1197_v0  ;;  %v1076_v43 = vadd.f32 %v1075_v13, %v3137_v62 }
 0x18e   : > { %v1375_v41 = vadd.f32 %v1374_v15, %v1306_v22  ;;  %v1138_v50 = vmul.f32 0.01, %v1001_v18  ;;  %v1401_v38 = vadd.f32 %v1400_v39, %v1308_v20  ;;  %v1140_v17 = vmul.f32 0.01, %v1074_v37 }
 0x18f   : > { %v1388_v29 = vadd.f32 %v1387_v24, %v1307_v12  ;;  %v1139_v36 = vmul.f32 0.01, %v1003_v8  ;;  %v1414_v40 = vadd.f32 %v1413_v7, %v1309_v28  ;;  %v1141_v30 = vmul.f32 0.01, %v1076_v43  ;;  %v3662_v7 = vld [vmem:[#allocation34_spill] sm:$0xff]  ;;  %v3663_v12 = vld [vmem:[#allocation35_spill] sm:$0xff] }
 0x190   : > { %v1202_v51 = vmax.f32 %v1001_v18, %v1138_v50  ;;  %v1323_v19 = vadd.f32 %v3167_v31, %v3183_v26  ;;  %v1204_v11 = vmax.f32 %v1074_v37, %v1140_v17  ;;  %v1336_v44 = vadd.f32 %v3170_v55, %v3186_v6 }
 0x191   : > { %v1203_v47 = vmax.f32 %v1003_v8, %v1139_v36  ;;  %v1349_v45 = vadd.f32 %v3172_v5, %v3189_v49  ;;  %v1205_v13 = vmax.f32 %v1076_v43, %v1141_v30  ;;  %v1362_v23 = vadd.f32 %v3176_v4, %v3194_v35  ;;  %v3657_v49 = vld [vmem:[#allocation25_spill] sm:$0xff] }
 0x192   : > { %v1314_v62 = vmul.f32 %v3191_v52, %v1202_v51  ;;  %v1324_v63 = vadd.f32 %v1323_v19, %v3200_v58  ;;  %v1316_v57 = vmul.f32 %v3191_v52, %v1204_v11  ;;  %v1337_v26 = vadd.f32 %v1336_v44, %v3204_v27 }
 0x193   : > { %v1315_v31 = vmul.f32 %v3191_v52, %v1203_v47  ;;  %v1350_v2 = vadd.f32 %v1349_v45, %v3207_v42  ;;  %v1317_v5 = vmul.f32 %v3191_v52, %v1205_v13  ;;  %v1363_v4 = vadd.f32 %v1362_v23, %v3210_v32 }
 0x194   : > { %v1376_v55 = vadd.f32 %v1375_v41, %v1314_v62  ;;  %v1325_v6 = vrot.slane %v1324_v63, 4  ;;  %vm1511_vm7 = vcmp.ge.s32.totalorder %v3657_v49, %v3101_v21  ;;  %vm1519_vm8 = vcmp.lt.s32.totalorder %v3657_v49, %v3107_v59 }
 0x195   : > { %v1402_v35 = vadd.f32 %v1401_v38, %v1316_v57  ;;  %v1389_v58 = vadd.f32 %v1388_v29, %v1315_v31  ;;  %v1338_v27 = vrot.slane %v1337_v26, 4  ;;  %v1351_v42 = vrot.slane %v1350_v2, 4  ;;  %vm3332_vm15 = vmand %vm1511_vm7, %vm1519_vm8 }
 0x196   : > { %vm1512_vm9 = vcmp.ge.s32.totalorder %v3658_v16, %v3101_v21  ;;  %vm1520_vm10 = vcmp.lt.s32.totalorder %v3658_v16, %v3107_v59  ;;  %v1377_v52 = vrot.slane %v1376_v55, 4  ;;  %v1415_v54 = vadd.f32 %v1414_v40, %v1317_v5 }
 0x197   : > { %v1326_v61 = vadd.f32 %v1325_v6, %v1324_v63  ;;  %v1364_v32 = vrot.slane %v1363_v4, 4  ;;  %vm1513_vm11 = vcmp.ge.s32.totalorder %v3659_v60, %v3101_v21  ;;  %vm1521_vm12 = vcmp.lt.s32.totalorder %v3659_v60, %v3107_v59  ;;  %vm3347_vm5 = vmand %vm1512_vm9, %vm1520_vm10 }
 0x198   : > { %v1403_v56 = vrot.slane %v1402_v35, 4  ;;  %v1390_v34 = vrot.slane %v1389_v58, 4  ;;  %v1339_v10 = vadd.f32 %v1338_v27, %v1337_v26  ;;  %v1352_v9 = vadd.f32 %v1351_v42, %v1350_v2  ;;  %v3668_v26 = vld [vmem:[#allocation21_spill] sm:$0xff]  ;;  %v3669_v2 = vld [vmem:[#allocation20_spill] sm:$0xff]  ;;  %v3674_v27 = vld [vmem:[#allocation22_spill] sm:$0xff] }
 0x199   : > { %vm1514_vm13 = vcmp.ge.s32.totalorder %v3660_v25, %v3101_v21  ;;  %vm1522_vm14 = vcmp.lt.s32.totalorder %v3660_v25, %v3107_v59  ;;  %v1378_v46 = vadd.f32 %v1377_v52, %v1376_v55  ;;  %v1416_v15 = vrot.slane %v1415_v54, 4  ;;  %vm3363_vm6 = vmand %vm1513_vm11, %vm1521_vm12 }
 0x19a   : > { %v1327_v48 = vrot.slane %v1326_v61, 2  ;;  %v1365_v1 = vadd.f32 %v1364_v32, %v1363_v4  ;;  %vm1523_vm0 = vcmp.lt.s32.totalorder %v3661_v53, %v3107_v59  ;;  %v1404_v39 = vadd.f32 %v1403_v56, %v1402_v35  ;;  %v3673_v35 = vld [vmem:[#allocation23_spill] sm:$0xff]  ;;  %v3678_v32 = vld [vmem:[#allocation28_spill] sm:$0xff]  ;;  %vm3379_vm7 = vmand %vm1514_vm13, %vm1522_vm14 }
 0x19b   : > { %v1391_v24 = vadd.f32 %v1390_v34, %v1389_v58  ;;  %v1340_v14 = vrot.slane %v1339_v10, 2  ;;  %v1353_v33 = vrot.slane %v1352_v9, 2  ;;  %vm1516_vm1 = vcmp.ge.s32.totalorder %v3662_v7, %v3101_v21 }
 0x19c   : > { %vm1524_vm2 = vcmp.lt.s32.totalorder %v3662_v7, %v3107_v59  ;;  %v1379_v22 = vrot.slane %v1378_v46, 2  ;;  %v1417_v0 = vadd.f32 %v1416_v15, %v1415_v54  ;;  %v1328_v18 = vadd.f32 %v1327_v48, %v1326_v61  ;;  %v3677_v54 = vld [vmem:[#allocation24_spill] sm:$0xff] }
 0x19d   : > { %v1366_v20 = vrot.slane %v1365_v1, 2  ;;  %vm1525_vm4 = vcmp.lt.s32.totalorder %v3663_v12, %v3107_v59  ;;  %v1405_v37 = vrot.slane %v1404_v39, 2  ;;  %v1392_v8 = vrot.slane %v1391_v24, 2  ;;  %vm3414_vm10 = vmand %vm1516_vm1, %vm1524_vm2 }
 0x19e   : > { %v1341_v41 = vadd.f32 %v1340_v14, %v1339_v10  ;;  %v1354_v28 = vadd.f32 %v1353_v33, %v1352_v9  ;;  %v1380_v50 = vadd.f32 %v1379_v22, %v1378_v46  ;;  %v1418_v43 = vrot.slane %v1417_v0, 2  ;;  %v3681_v10 = vld [vmem:[#allocation29_spill] sm:$0xff]  ;;  %v3682_v46 = vld [vmem:[#allocation30_spill] sm:$0xff] }
 0x19f   : > { %v1329_v38 = vrot.slane %v1328_v18, 1  ;;  %v1367_v29 = vadd.f32 %v1366_v20, %v1365_v1  ;;  %v1406_v17 = vadd.f32 %v1405_v37, %v1404_v39  ;;  %v1393_v36 = vadd.f32 %v1392_v8, %v1391_v24  ;;  %v3686_v39 = vld [vmem:[#allocation31_spill] sm:$0xff] }
 0x1a0   : > { %v1342_v40 = vrot.slane %v1341_v41, 1  ;;  %v1355_v51 = vrot.slane %v1354_v28, 1  ;;  %v1381_v30 = vrot.slane %v1380_v50, 1  ;;  %v1419_v19 = vadd.f32 %v1418_v43, %v1417_v0 }
 0x1a1   : > { %v1330_v11 = vadd.f32 %v1329_v38, %v1328_v18  ;;  %v1368_v47 = vrot.slane %v1367_v29, 1  ;;  %v1407_v45 = vrot.slane %v1406_v17, 1  ;;  %v1394_v62 = vrot.slane %v1393_v36, 1 }
 0x1a2   : > { %v1343_v13 = vadd.f32 %v1342_v40, %v1341_v41  ;;  %v1356_v63 = vadd.f32 %v1355_v51, %v1354_v28  ;;  %v1382_v57 = vadd.f32 %v1381_v30, %v1380_v50  ;;  %v1420_v3 = vrot.slane %v1419_v19, 1 }
 0x1a3   : > { %v1369_v31 = vadd.f32 %v1368_v47, %v1367_v29  ;;  %v3670_v55 = vrot.slane %v3668_v26, %v3669_v2  ;;  %v1408_v4 = vadd.f32 %v1407_v45, %v1406_v17  ;;  %v1395_v49 = vadd.f32 %v1394_v62, %v1393_v36 }
 0x1a4   : > { %v3352_v58 = vadd.f32 %v3673_v35, %v1343_v13  ;;  %v3355_v42 = vadd.f32 %v3674_v27, %v1356_v63  ;;  %v1421_v52 = vadd.f32 %v1420_v3, %v1419_v19  ;;  %v3371_v56 = vadd.f32 %v3678_v32, %v1382_v57  ;;  %v1608_v63 = vld [vmem:[#allocation2] sm:$0x7] }
 0x1a5   : > { %v3339_v5 = vadd.f32 %v3670_v55, %v1330_v11  ;;  %v3368_v61 = vadd.f32 %v3677_v54, %v1369_v31  ;;  %v3386_v9 = vadd.f32 %v3681_v10, %v1395_v49  ;;  %v3389_v15 = vadd.f32 %v3682_v46, %v1408_v4 }
 0x1a6   : > { %vm3683_vm8 = vcmp.ge.s32.totalorder %v3661_v53, %v3101_v21  ;;  %v1557_v48 = vrot.slane %v3352_v58, %v3669_v2  ;;  %v1561_v1 = vrot.slane %v3355_v42, %v3669_v2  ;;  %v3406_v24 = vadd.f32 %v3686_v39, %v1421_v52 }
 0x1a7   : > { %v1553_v60 = vrot.slane %v3339_v5, %v3669_v2  ;;  %vm3397_vm9 = vmand %vm3683_vm8, %vm1523_vm0  ;;  %v1565_v14 = vrot.slane %v3368_v61, %v3669_v2  ;;  %v1569_v33 = vrot.slane %v3371_v56, %v3669_v2  ;;  %vm3689_vm11 = vcmp.ge.s32.totalorder %v3663_v12, %v3101_v21 }
 0x1a8   : > { %vm3430_vm12 = vmand %vm3689_vm11, %vm1525_vm4  ;;  %v1573_v0 = vrot.slane %v3386_v9, %v3669_v2  ;;  %v1577_v18 = vrot.slane %v3389_v15, %v3669_v2  ;;  %v1583_v20 = vsel %vm3332_vm15, %v1557_v48, -1e+30  ;;  %v1584_v37 = vsel %vm3347_vm5, %v1561_v1, -1e+30 }
 0x1a9   : > { %v1582_v22 = vsel %vm3322_vm3, %v1553_v60, -1e+30  ;;  %v1581_v59 = vrot.slane %v3406_v24, %v3669_v2  ;;  %v1585_v21 = vsel %vm3363_vm6, %v1565_v14, -1e+30  ;;  %v1586_v12 = vsel %vm3379_vm7, %v1569_v33, -1e+30 }
 0x1aa   : > { %vm3692_vm13 = vcmask 1042432   ;;  %v1587_v41 = vsel %vm3397_vm9, %v1573_v0, -1e+30  ;;  %v1588_v28 = vsel %vm3414_vm10, %v1577_v18, -1e+30  ;;  %v2628_v4 = vmov 0.0  }
 0x1ab   : > { %v1591_v8 = vsel %vm3692_vm13, %v1582_v22, -inf  ;;  %vm3693_vm14 = vmmov %vm3692_vm13  ;;  %v1589_v38 = vsel %vm3430_vm12, %v1581_v59, -1e+30  ;;  %v3468_v49 = vsel %vm3322_vm3, 1.0, %v2628_v4  ;;  %v3472_v35 = vsel %vm3347_vm5, 1.0, %v2628_v4 }
 0x1ac   : > { %v1592_v50 = vsel %vm3693_vm14, %v1583_v20, -inf  ;;  %vm3694_vm0 = vmmov %vm3692_vm13  ;;  %vm1613_vm13 = vcmask 2048   ;;  %v3476_v27 = vsel %vm3379_vm7, 1.0, %v2628_v4  ;;  %v3480_v52 = vsel %vm3332_vm15, 1.0, %v2628_v4 }
 0x1ad   : > { %v1593_v43 = vsel %vm3694_vm0, %v1584_v37, -inf  ;;  %vm3695_vm1 = vmmov %vm3694_vm0  ;;  %v3484_v54 = vsel %vm3363_vm6, 1.0, %v2628_v4  ;;  %v3488_v44 = vsel %vm3397_vm9, 1.0, %v2628_v4  ;;  %v3492_v6 = vsel %vm3430_vm12, 1.0, %v2628_v4 }
 0x1ae   : > { %v1594_v29 = vsel %vm3695_vm1, %v1585_v21, -inf  ;;  %vm3696_vm2 = vmmov %vm3694_vm0  ;;  %v3496_v32 = vsel %vm3414_vm10, 1.0, %v2628_v4 }
 0x1af   : > { %v1595_v17 = vsel %vm3696_vm2, %v1586_v12, -inf  ;;  %vm3697_vm4 = vmmov %vm3694_vm0 }
 0x1b0   : > { %v1597_v36 = vsel %vm3697_vm4, %v1587_v41, -inf  ;;  %v1596_v40 = vmax.f32 %v1591_v8, %v1595_v17  ;;  %vm3698_vm8 = vmmov %vm3694_vm0 }
 0x1b1   : > { %v1598_v51 = vmax.f32 %v1592_v50, %v1597_v36  ;;  %v1599_v30 = vsel %vm3698_vm8, %v1588_v28, -inf  ;;  %vm3699_vm11 = vmmov %vm3694_vm0 }
 0x1b2   : > { %v1601_v19 = vsel %vm3699_vm11, %v1589_v38, -inf  ;;  %v1600_v11 = vmax.f32 %v1593_v43, %v1599_v30  ;;  %vm3700_vm15 = vmmov %vm3694_vm0 }
 0x1b3   : > { %v1602_v47 = vmax.f32 %v1594_v29, %v1601_v19  ;;  %v1603_v45 = vmax.f32 %v1596_v40, %v1598_v51  ;;  %vm3701_vm3 = vmmov %vm3694_vm0 }
 0x1b4   : > { %vm3702_vm5 = vmmov %vm3694_vm0 }
 0x1b5   : > { %v1604_v62 = vmax.f32 %v1600_v11, %v1602_v47  ;;  %vm3703_vm6 = vmmov %vm3694_vm0 }
 0x1b6   : > { %vm3704_vm7 = vmmov %vm3694_vm0 }
 0x1b7   : > { %v1605_v13 = vmax.f32 %v1603_v45, %v1604_v62  ;;  %vm3705_vm9 = vmmov %vm3694_vm0 }
 0x1b8   : > { %vm3706_vm10 = vmmov %vm3694_vm0 }
 0x1b9   : > { %1606 = vmax.xlane.f32.xlu0 %v1605_v13  ;;  %vm3707_vm12 = vmmov %vm3694_vm0 }
 0x1ba   : > { %vm3708_vm14 = vmmov %vm3694_vm0 }
 0x1bb   : > { %vm3709_vm1 = vmmov %vm3694_vm0 }
 0x1bc   : > { %vm3711_vm2 = vmmov %vm3694_vm0 }
 0x1bd   : > { %vm3715_vm4 = vmmov %vm3694_vm0 }
 0x1be   : > { %vm3716_vm8 = vmmov %vm3694_vm0 }
 0x1bf   : > { %vm3718_vm11 = vmmov %vm3694_vm0 }
 0x246   : > { %v1607_v57 = vpop.xlane.xlu0 %1606 }
 0x247   : > { %v1609_v3 = vmax.f32 %v1608_v63, %v1607_v57 }
 0x249   : > { %v1610_v31 = vsub.f32 %v1608_v63, %v1609_v3  ;;  %1614 = vst.msk [vmem:[#allocation2] sm:$0x7] %vm1613_vm13, %v1609_v3  ;;  %1617 = vperm.xlu1 %2484, %v1609_v3  }
 0x24b   : > { %v1611_v26 = vmul.f32 1.442695, %v1610_v31 }
 0x24d   : > { %2489 = vpow2.f32 %v1611_v26 }
 0x257   : > { %v3463_v55 = vpop.eup %2489 }
 0x258   : > { %1804 = vperm.xlu0 %2483, %v3463_v55  }
 0x2c8   : > { %v1618_v34 = vpop.permute.xlu1 %1617 }
 0x2c9   : > { %v1620_v23 = vmul.f32 %v3468_v49, %v1618_v34  ;;  %v1622_v60 = vmul.f32 %v3472_v35, %v1618_v34  ;;  %v1624_v16 = vmul.f32 %v3476_v27, %v1618_v34  ;;  %v1621_v10 = vmul.f32 %v3480_v52, %v1618_v34 }
 0x2ca   : > { %v1623_v46 = vmul.f32 %v3484_v54, %v1618_v34  ;;  %v1625_v25 = vmul.f32 %v3488_v44, %v1618_v34  ;;  %v1627_v48 = vmul.f32 %v3492_v6, %v1618_v34  ;;  %v1626_v1 = vmul.f32 %v3496_v32, %v1618_v34 }
 0x2cb   : > { %v1628_v39 = vsel %vm3700_vm15, %v1620_v23, 0.0  ;;  %v1642_v53 = vsel %vm3701_vm3, %v1622_v60, 0.0  ;;  %v1656_v14 = vsel %vm3702_vm5, %v1624_v16, 0.0  ;;  %v1635_v33 = vsel %vm3703_vm6, %v1621_v10, 0.0  ;;  %vm3720_vm15 = vmmov %vm3694_vm0 }
 0x2cc   : > { %v1629_v22 = vrot.slane %v1628_v39, 4  ;;  %v1643_v7 = vrot.slane %v1642_v53, 4  ;;  %v1657_v0 = vrot.slane %v1656_v14, 4  ;;  %v1636_v18 = vrot.slane %v1635_v33, 4 }
 0x2cd   : > { %v1649_v20 = vsel %vm3704_vm7, %v1623_v46, 0.0  ;;  %v1663_v37 = vsel %vm3705_vm9, %v1625_v25, 0.0  ;;  %v1677_v59 = vsel %vm3706_vm10, %v1627_v48, 0.0  ;;  %v1670_v21 = vsel %vm3707_vm12, %v1626_v1, 0.0 }
 0x2ce   : > { %v1630_v12 = vadd.f32 %v1629_v22, %v1628_v39  ;;  %v1644_v8 = vadd.f32 %v1643_v7, %v1642_v53  ;;  %v1658_v41 = vadd.f32 %v1657_v0, %v1656_v14  ;;  %v1637_v28 = vadd.f32 %v1636_v18, %v1635_v33 }
 0x2cf   : > { %v1650_v50 = vrot.slane %v1649_v20, 4  ;;  %v1664_v43 = vrot.slane %v1663_v37, 4  ;;  %v1678_v38 = vrot.slane %v1677_v59, 4  ;;  %v1671_v29 = vrot.slane %v1670_v21, 4 }
 0x2d0   : > { %v1631_v17 = vrot.slane %v1630_v12, 2  ;;  %v1645_v36 = vrot.slane %v1644_v8, 2  ;;  %v1659_v40 = vrot.slane %v1658_v41, 2  ;;  %v1638_v51 = vrot.slane %v1637_v28, 2 }
 0x2d1   : > { %v1651_v30 = vadd.f32 %v1650_v50, %v1649_v20  ;;  %v1665_v19 = vadd.f32 %v1664_v43, %v1663_v37  ;;  %v1679_v11 = vadd.f32 %v1678_v38, %v1677_v59  ;;  %v1672_v47 = vadd.f32 %v1671_v29, %v1670_v21 }
 0x2d2   : > { %v1632_v45 = vadd.f32 %v1631_v17, %v1630_v12  ;;  %v1646_v62 = vadd.f32 %v1645_v36, %v1644_v8  ;;  %v1660_v13 = vadd.f32 %v1659_v40, %v1658_v41  ;;  %v1639_v63 = vadd.f32 %v1638_v51, %v1637_v28 }
 0x2d3   : > { %v1652_v57 = vrot.slane %v1651_v30, 2  ;;  %v1666_v3 = vrot.slane %v1665_v19, 2  ;;  %v1680_v31 = vrot.slane %v1679_v11, 2  ;;  %v1673_v26 = vrot.slane %v1672_v47, 2 }
 0x2d4   : > { %v1633_v4 = vrot.slane %v1632_v45, 1  ;;  %v1647_v34 = vrot.slane %v1646_v62, 1  ;;  %v1661_v23 = vrot.slane %v1660_v13, 1  ;;  %v1640_v60 = vrot.slane %v1639_v63, 1 }
 0x2d5   : > { %v1653_v16 = vadd.f32 %v1652_v57, %v1651_v30  ;;  %v1667_v10 = vadd.f32 %v1666_v3, %v1665_v19  ;;  %v1681_v46 = vadd.f32 %v1680_v31, %v1679_v11  ;;  %v1674_v25 = vadd.f32 %v1673_v26, %v1672_v47 }
 0x2d6   : > { %v1648_v48 = vadd.f32 %v1647_v34, %v1646_v62  ;;  %v1634_v1 = vadd.f32 %v1633_v4, %v1632_v45  ;;  %v1641_v39 = vadd.f32 %v1640_v60, %v1639_v63  ;;  %v1662_v53 = vadd.f32 %v1661_v23, %v1660_v13 }
 0x2d7   : > { %v1654_v14 = vrot.slane %v1653_v16, 1  ;;  %v1668_v33 = vrot.slane %v1667_v10, 1  ;;  %v1682_v22 = vrot.slane %v1681_v46, 1  ;;  %v1675_v7 = vrot.slane %v1674_v25, 1 }
 0x2d8   : > { %v1684_v0 = vsub.f32 %v3339_v5, %v1634_v1  ;;  %v1685_v18 = vsub.f32 %v3352_v58, %v1641_v39  ;;  %v1686_v20 = vsub.f32 %v3355_v42, %v1648_v48  ;;  %v1688_v50 = vsub.f32 %v3371_v56, %v1662_v53  ;;  %v3712_v48 = vld [vmem:[#allocation15_spill] sm:$0xff]  ;;  %v3713_v1 = vld [vmem:[#allocation16_spill] sm:$0xff]  ;;  %v3714_v39 = vld [vmem:[#allocation17_spill] sm:$0xff] }
 0x2d9   : > { %v1655_v37 = vadd.f32 %v1654_v14, %v1653_v16  ;;  %v1669_v59 = vadd.f32 %v1668_v33, %v1667_v10  ;;  %v1683_v21 = vadd.f32 %v1682_v22, %v1681_v46  ;;  %v1676_v12 = vadd.f32 %v1675_v7, %v1674_v25  ;;  %v3717_v22 = vld [vmem:[#allocation18_spill] sm:$0xff] }
 0x2da   : > { %v1692_v8 = vmul.f32 1.442695, %v1684_v0  ;;  %v1694_v41 = vmul.f32 1.442695, %v1685_v18  ;;  %v1696_v28 = vmul.f32 1.442695, %v1686_v20 }
 0x2db   : > { %v1687_v43 = vsub.f32 %v3368_v61, %v1655_v37  ;;  %v1689_v38 = vsub.f32 %v3386_v9, %v1669_v59  ;;  %v1691_v29 = vsub.f32 %v3406_v24, %v1683_v21  ;;  %v1690_v5 = vsub.f32 %v3389_v15, %v1676_v12  ;;  %v3719_v0 = vld [vmem:[#allocation19_spill] sm:$0xff] }
 0x2dc   : > { %2491 = vpow2.f32 %v1692_v8  ;;  %v1700_v36 = vmul.f32 1.442695, %v1688_v50  ;;  %vm2089_vm3 = vcmask 256000   ;;  %vm2116_vm5 = vcmask (!%p2347_p12), 261120  }
 0x2dd   : > { %2493 = vpow2.f32 %v1694_v41  ;;  %v1698_v58 = vmul.f32 1.442695, %v1687_v43  ;;  %v1702_v42 = vmul.f32 1.442695, %v1689_v38  ;;  %v1706_v17 = vmul.f32 1.442695, %v1691_v29  ;;  %v1805_v38 = vpop.permute.xlu0 %1804 }
 0x2de   : > { %2495 = vpow2.f32 %v1696_v28  ;;  %v1704_v40 = vmul.f32 1.442695, %v1690_v5  ;;  %v1801_v43 = vld [vmem:[#allocation4] sm:$0x7] }
 0x2df   : > { %2497 = vpow2.f32 %v1698_v58 }
 0x2e0   : > { %2499 = vpow2.f32 %v1702_v42 }
 0x2e1   : > { %2501 = vpow2.f32 %v1706_v17  ;;  %v1807_v17 = vmul.f32 %v1805_v38, %v1801_v43 }
 0x2e2   : > { %2503 = vpow2.f32 %v1700_v36 }
 0x2e3   : > { %2505 = vpow2.f32 %v1704_v40 }
 0x2e6   : > { %v2492_v61 = vpop.eup %2491 }
 0x2e7   : > { %v2494_v56 = vpop.eup %2493  ;;  %v1711_v9 = vrot.slane %v2492_v61, %v3669_v2 }
 0x2e8   : > { %v2496_v24 = vpop.eup %2495  ;;  %v1715_v15 = vrot.slane %v2494_v56, %v3669_v2  ;;  %v2629_v56 = vmov (!%p2347_p12), 0  }
 0x2e9   : > { %v2498_v51 = vpop.eup %2497  ;;  %v1740_v30 = vmul.f32 %v3468_v49, %v1711_v9  ;;  %v1719_v19 = vrot.slane %v2496_v24, %v3669_v2  ;;  %2507 = vset.pattern.permute.xlu0 (!%p2347_p12), %v2629_v56  ;;  %v2105_v24 = vld [vmem:[%s3614_s6] sm:$0xff] (!%p2347_p12) }
 0x2ea   : > { %v2500_v11 = vpop.eup %2499  ;;  %v1741_v47 = vmul.f32 %v3480_v52, %v1715_v15  ;;  %v1723_v45 = vrot.slane %v2498_v51, %v3669_v2  ;;  %v2106_v15 = vld [vmem:[%s3614_s6 + $0x8] sm:$0xff] (!%p2347_p12)  ;;  %v2107_v51 = vld [vmem:[%s3614_s6 + $0x10] sm:$0xff] (!%p2347_p12) }
 0x2eb   : > { %v2502_v62 = vpop.eup %2501  ;;  %v1750_v13 = vsel %vm3708_vm14, %v1740_v30, 0.0  ;;  %v1742_v63 = vmul.f32 %v3472_v35, %v1719_v19  ;;  %v1731_v57 = vrot.slane %v2500_v11, %v3669_v2  ;;  %v3710_v35 = vld [vmem:[#allocation14_spill] sm:$0xff]  ;;  %v2404_v19 = vpack.c.bf16 (!%p2347_p12), %v2106_v15, %v2105_v24  ;;  %v2108_v11 = vld [vmem:[%s3614_s6 + $0x18] sm:$0xff] (!%p2347_p12) }
 0x2ec   : > { %v2504_v3 = vpop.eup %2503  ;;  %v1751_v31 = vsel %vm3694_vm0, %v1741_v47, 0.0  ;;  %1872 = vmatprep.mubr.f32.mxu0 %v1741_v47  ;;  %v1743_v49 = vmul.f32 %v3484_v54, %v1723_v45  ;;  %v1739_v26 = vrot.slane %v2502_v62, %v3669_v2  ;;  %v2632_v47 = vmov (!%p2347_p12), 0.0  }
 0x2ed   : > { %v2506_v4 = vpop.eup %2505  ;;  %v1752_v34 = vadd.f32 %v1751_v31, %v1750_v13  ;;  %1873 = vmatmul.mubr.f32.vlgmr.msra.gmra.mrb[32].mxu0 %v1740_v30  ;;  %v1745_v52 = vmul.f32 %v3488_v44, %v1731_v57  ;;  %v1727_v23 = vrot.slane %v2504_v3, %v3669_v2  ;;  %v1753_v60 = vsel %vm3709_vm1, %v1742_v63, 0.0  ;;  %v2348_v3 = vld [vmem:[%s3615_s7] ss:$0 sm:$0xff] (!%p2347_p12) }
 0x2ee   : > { %1942 = vmatprep.mubr.f32.mxu1 %v1743_v49  ;;  %2390 = vmatpush1.bf16.xpose.msra.mxu0 %v3710_v35  ;;  %v1747_v16 = vmul.f32 %v3492_v6, %v1739_v26  ;;  %v1735_v10 = vrot.slane %v2506_v4, %v3669_v2  ;;  %v1755_v25 = vsel %vm3711_vm2, %v1743_v49, 0.0  ;;  %v2630_v30 = vmov (!%p2347_p12), 0.0|0.0  }
 0x2ef   : > { %v1754_v46 = vadd.f32 %v1753_v60, %v1752_v34  ;;  %1943 = vmatmul.mubr.f32.vlgmr.msra.gmra.mrb[32].mxu1 %v1742_v63  ;;  %2012 = vmatprep.mubr.f32.mxu0 %v1745_v52  ;;  %v1744_v54 = vmul.f32 %v3476_v27, %v1727_v23  ;;  %v1759_v14 = vsel %vm3716_vm8, %v1745_v52, 0.0  ;;  %v2407_v45 = vpack.c.bf16 (!%p2347_p12), %v2108_v11, %v2107_v51 }
 0x2f0   : > { %2398 = vmatpush1.bf16.xpose.msra.mxu1 %v3712_v48  ;;  %2082 = vmatprep.mubr.f32.mxu1 %v1747_v16  ;;  %v1746_v53 = vmul.f32 %v3496_v32, %v1735_v10  ;;  %v1763_v18 = vsel %vm3720_vm15, %v1747_v16, 0.0  ;;  %v1748_v32 = vld [vmem:[#allocation3] sm:$0x7] }
 0x2f1   : > { %v1756_v44 = vadd.f32 %v1755_v25, %v1754_v46  ;;  %2392 = vmatprep.subr.bf16.mxu0 %v3713_v1  ;;  %2400 = vmatprep.subr.bf16.mxu1 %v3714_v39  ;;  %v1757_v6 = vsel %vm3715_vm4, %v1744_v54, 0.0  ;;  %v1749_v37 = vmul.f32 %v3463_v55, %v1748_v32 }
 0x2f2   : > { %v1761_v27 = vsel %vm3718_vm11, %v1746_v53, 0.0 }
 0x2f3   : > { %v1758_v2 = vadd.f32 %v1757_v6, %v1756_v44 }
 0x2f5   : > { %v1760_v33 = vadd.f32 %v1759_v14, %v1758_v2 }
 0x2f6   : > { %2394 = vmatpush1.bf16.xpose.msra.mxu0 %v3717_v22 }
 0x2f7   : > { %v1762_v7 = vadd.f32 %v1761_v27, %v1760_v33  ;;  %2403 = vmatprep.subr.bf16.mxu0 (!%p2347_p12), %v2630_v30 }
 0x2f8   : > { %2402 = vmatpush1.bf16.xpose.msra.mxu1 %v3719_v0 }
 0x2f9   : > { %v1764_v20 = vadd.f32 %v1763_v18, %v1762_v7 }
 0x2fb   : > { %1765 = vadd.xlane.f32.xlu1 %v1764_v20 }
 0x2fd   : > { %2013 = vmatmul.mubr.f32.vlgmr.msra.gmra.mrb[34].mxu0 %v1744_v54 }
 0x2fe   : > { %2405 = vmatpush3.bf16.msra.mxu0 (!%p2347_p12), %v2404_v19 }
 0x2ff   : > { %2083 = vmatmul.mubr.f32.vlgmr.msra.gmra.mrb[34].mxu1 %v1746_v53  ;;  %2406 = vmatprep.subr.bf16.mxu0 (!%p2347_p12), %v2630_v30 }
 0x302   : > { %2408 = vmatpush3.bf16.msra.mxu0 (!%p2347_p12), %v2407_v45 }
 0x388   : > { %v1766_v59 = vpop.xlane.xlu1 %1765 }
 0x389   : > { %v1767_v21 = vadd.f32 %v1766_v59, %v1749_v37 }
 0x38b   : > { %1768 = vst.msk [vmem:[#allocation3] sm:$0x7] %vm1613_vm13, %v1767_v21  ;;  %vm2631_vm13 = vmmov (!%p2347_p12), 0  }
 0x38c   : > { %2368 = vmatprep.mubr.msk.f32.mxu0 (!%p2347_p12), %vm2631_vm13, %v2632_v47 }
 0x392   : > { %v2095_v61 = vld [vmem:[#allocation3] sm:$0x7] (!%p2347_p12) }
 0x393   : > { %v2096_v9 = vmax.f32 (!%p2347_p12), %v2095_v61, 1e-30 }
 0x395   : > { %2100 = vperm.xlu0 (!%p2347_p12), %2507, %v2096_v9  }
 0x3c0   : > { %v1874_v12 = vpop.f32.mrb[32].mxu0 }
 0x3c1   : > { %v1876_v8 = vpop.f32.mrb[33].mxu0 }
 0x3c2   : > { %v1944_v41 = vpop.f32.mrb[32].mxu1 }
 0x3c3   : > { %v1945_v28 = vadd.f32 %v1944_v41, %v1874_v12  ;;  %v1946_v50 = vpop.f32.mrb[33].mxu1 }
 0x3d0   : > { %v2014_v29 = vpop.f32.mrb[34].mxu0 }
 0x3d1   : > { %v2015_v5 = vadd.f32 %v2014_v29, %v1945_v28  ;;  %v2016_v58 = vpop.f32.mrb[35].mxu0  ;;  %2094 = sbr.rel (%p2347_p12) target bundleno = 1273 (0x4f9), region = 60 }
 0x3d2   : > { %v2084_v42 = vpop.f32.mrb[34].mxu1 }
 0x3d3   : > { %v2085_v36 = vadd.f32 %v2084_v42, %v2015_v5  ;;  %v2086_v40 = vpop.f32.mrb[35].mxu1 }
 0x3d5   : > { %v2088_v55 = vadd.f32 %v2085_v36, %v1807_v17 }
 0x3d7   : > { %2090 = vst.msk [vmem:[#allocation4] sm:$0x7] %vm2089_vm3, %v2088_v55 }
 0x3de   : > { %v2097_v13 = vld [vmem:[#allocation4] sm:$0x7] }
 0x414   : > { %v2101_v62 = vpop.permute.xlu0 %2100 }
 0x415   : > { %2508 = vrcp.f32 %v2101_v62 }
 0x41f   : > { %v2509_v63 = vpop.eup %2508 }
 0x420   : > { %v2104_v57 = vmul.f32 %v2509_v63, %v2097_v13 }
 0x422   : > { %2369 = vmatmul.mubr.msk.f32.vlgmr.msra.gmra.mrb[0].mxu0 %vm2116_vm5, %v2104_v57 }
 0x4f5   : > { %v2186_v31 = vpop.f32.mrb[0].mxu0 }
 0x4f6   : > { %v2187_v49 = vadd.f32 %v2348_v3, %v2186_v31  ;;  %v2370_v26 = vpop.f32.mrb[1].mxu0 }
 0x4f8   : > { %2190 = vst.msk [vmem:[#allocation10] sm:$0x7] %vm2089_vm3, %v2187_v49 }
 0x4f9 PF: > { %p2436_p9 = scmp.eq.s32.totalorder %s2701_s13, 2  ;;  %s2633_s25 = smov [#allocation10]  }
 0x4fa   : > { %s2198_s29 = sshll.u32 %s2633_s25, 4  ;;  %s2199_s29 = int_to_ptr.vmem [resolvable:$true] %s2198_s29 }
 0x4fb   : > { %s2552_s30 = scalar_lea.vmem %s2199_s29, 64  ;;  %p2559_p2 = scmp.lt.s32.totalorder %s2199_s29, %s2199_s29 }
 0x4fc   : > { %p2553_p10 = scmp.ne.s32.totalorder %s2199_s29, %s2552_s30  ;;  %p2560_p4 = scmp.lt.s32.totalorder %s2552_s30, %s2552_s30 }
 0x4fe   : > { %p2554_p11 = pnand %p2553_p10, %p2436_p9  ;;  %p2561_p5 = por %p2560_p4, %p2559_p2 }
 0x500   : > { %p2555_p0 = pneg %p2554_p11 }
 0x502   : > { %p2562_p6 = pnand %p2561_p5, %p2555_p0 }
 0x504   : > { %2565 = shalt.err (!%p2562_p6)
}
 0x505   : > { %s2566_s12 = scalar_lea.hbm %s3616_s8, 64 }
 0x506   : > { %p2567_p1 = scmp.ne.s32.totalorder %s3616_s8, %s2566_s12  ;;  %p2572_p8 = scmp.lt.u32.totalorder %s2566_s12, %s3616_s8 }
 0x508   : > { %p2568_p3 = pnand %p2567_p1, %p2436_p9 }
 0x50a   : > { %p2569_p7 = pneg %p2568_p3 }
 0x50c   : > { %p2574_p13 = pnand %p2572_p8, %p2569_p7 }
 0x50e   : > { %2577 = shalt.err (!%p2574_p13)
}
 0x50f   : > { %2428 = dma.vmem_to_hbm [thread:$0]  (%p2436_p9), %s2199_s29, 64, %s3616_s8, [#allocation9]  }
 0x510   : > { %2601 = dma.done.wait (%p2436_p9), [#allocation9], 64  }
 0x511   : > { %2603 = vsyncadd (%p2436_p9), [#allocation9], 4294967232 }
 0x512 PF: > { %p25_p12 = scmp.ge.s32.totalorder %s2704_s14, 5   ;;  %s3721_s10 = smov %s2610_s11 }
 0x513   : > { %s3722_s11 = smov %s2614_s0  ;;  %s3723_s0 = smov %s2714_s17 }
 0x514   : > { %s3724_s12 = smov %s2704_s14  ;;  %27 = sbr.rel (!%p25_p12) target bundleno = 19 (0x13), region = 96 }
 0x51b   :  { %2211 = vsyncpa [#allocation8], 1 }
 0x51c   :  { %2213 = vsyncpa [#allocation8 + $0x1], 1 }
 0x51d   :  { %2214 = vsyncpa [#allocation9], 1 }
 0x51e   :  { %2216 = vsyncpa [#allocation9 + $0x1], 1 }

</bundles_post_ra>
